<compile_context>
chip_gen: v7x
topology: tpu7x:2x2x1
jax: 0.10.0
libtpu: 0.0.40
codegen_flags: <defaults>
</compile_context>

<pallas_src>
import jax
import jax.numpy as jnp
from jax import lax
from jax.experimental import pallas as pl
from jax.experimental.pallas import tpu as pltpu


def _round_up(x, m):
    return ((x + m - 1) // m) * m


def _physical_vmem_bytes():
    """Per-core physical VMEM (generation-aware tiling / VMEM budgeting)."""
    try:
        info = pltpu.get_tpu_info()
        for name in ("vmem_capacity_bytes", "vmem_bytes", "vmem_size_bytes"):
            v = getattr(info, name, None)
            if v:
                return int(v)
    except Exception:
        pass
    return 64 << 20  # conservative (v7x); v5e/v6e have 128 MiB physical


def _choose_bag_tile(batch, n_pad, e, x_block_budget_bytes):
    """Bags per grid step.

    Aim for >=1024 flattened MXU rows per step while the f32 (TB, N, E) input
    block (double-buffered by the pipeline) stays within the generation-aware
    budget.  Keep TB a multiple of 8 so the rank-2 output blocks are
    sublane-dense, and keep >=2 grid steps for larger batches so v7x's two
    TensorCores both get work under dimension_semantics=('parallel',).
    """
    if batch <= 8:
        return batch                                    # tiny batch: one dense step
    rows_target = 1024
    tb = max(1, pl.cdiv(rows_target, n_pad))
    rows_cap = max(1, x_block_budget_bytes // (n_pad * e * 4))
    tb = min(tb, rows_cap, batch)
    tb = max(8, (tb // 8) * 8)
    two_step_cap = max(8, (pl.cdiv(batch, 2) // 8) * 8)
    return min(tb, two_step_cap)


def _make_kernel(n_real, hd):
    """Builds the kernel body; n_real (pre-padding bag capacity) is static."""

    def kernel(lens_ref, x_ref, w1_ref, b1_ref, w2uv_ref, b2uv_ref, wa_ref,
               wo_ref, out_ref, attr_ref, atth_ref):
        tb, n, e = x_ref.shape

        # Flatten bags so every matmul sees M = TB*N rows.  The reshape is done
        # on the f32 block (n is a multiple of 8) so it is tile-aligned / free.
        x = x_ref[...].reshape(tb * n, e).astype(jnp.bfloat16)

        # encoder L1: Dropout(id) -> Linear(E,256) -> ReLU   (bf16 in, f32 acc)
        h1 = jnp.dot(x, w1_ref[...], preferred_element_type=jnp.float32)
        h1 = jnp.maximum(h1 + b1_ref[...], 0.0).astype(jnp.bfloat16)

        # fused encoder L2 + attention_U + attention_V: a single K=256 matmul
        # producing [h | U_pre | V_pre] (wrapper pre-multiplied w2 @ [wu | wv]).
        huv = jnp.dot(h1, w2uv_ref[...], preferred_element_type=jnp.float32)
        huv = huv + b2uv_ref[...]
        h = huv[:, :hd]                                          # (TB*N, 128) f32
        gated = jnp.tanh(huv[:, hd:2 * hd]) * jax.nn.sigmoid(huv[:, 2 * hd:])

        # attention: Linear(128, 1, bias=False) as a VPU multiply + lane reduce
        gated3 = gated.reshape(tb, n, hd)
        logits = jnp.sum(gated3 * wa_ref[...], axis=-1)          # (TB, N) f32

        # positions added only for layout padding must not change the softmax
        if n != n_real:
            pos = lax.broadcasted_iota(jnp.int32, (tb, n), 1)
            logits = jnp.where(pos < n_real, logits, jnp.float32(-1e30))

        # softmax over the (real) bag axis, then hard mask to bag_lens
        # (no renormalization — exactly like the reference module)
        m = jnp.max(logits, axis=-1, keepdims=True)
        ex = jnp.exp(logits - m)
        att = ex * pl.reciprocal(jnp.sum(ex, axis=-1, keepdims=True), approx=True)
        pos = lax.broadcasted_iota(jnp.int32, (tb, n), 1)
        att = att * (pos < lens_ref[...]).astype(att.dtype)      # (TB, N) f32

        # attention pooling on the MXU: att_H[b] = att[b] @ h[b]
        h3 = h.reshape(tb, n, hd).astype(jnp.bfloat16)
        att_h = jnp.einsum("bqn,bnh->bqh",
                           att[:, None, :].astype(jnp.bfloat16), h3,
                           preferred_element_type=jnp.float32)
        att_h = att_h.reshape(tb, hd)                            # (TB, 128) f32

        # fc_out: Linear(128, out_dim, bias=False), output lane-padded to 128*
        out = jnp.dot(att_h.astype(jnp.bfloat16), wo_ref[...],
                      preferred_element_type=jnp.float32)

        out_ref[...] = out.astype(out_ref.dtype)
        attr_ref[...] = att.astype(attr_ref.dtype)
        atth_ref[...] = att_h.astype(atth_ref.dtype)

    return kernel


def gated_attention_pool(x, bag_lens, params):
    """x: (B, N, E) float32, bag_lens: (B,) int.

    Returns (output (B, out_dim), att_r (B, N), att_H (B, 1, 128)), matching
    the PyTorch module's forward().
    """
    B, N, E = x.shape
    (w1, b1, w2, b2, wu, bu, wv, bv, wa, wo) = params
    hd = w2.shape[1]                      # 128
    out_dim = wo.shape[1]
    out_p = _round_up(out_dim, 128)       # lane-dense fc_out output
    n_pad = _round_up(N, 8)               # tile-aligned (TB,N,E)<->(TB*N,E) reshapes

    phys_vmem = _physical_vmem_bytes()
    # generation-aware x-block budget: v7x (64 MiB VMEM) ~6 MiB, v5e/v6e ~12 MiB
    # (the pipeline double-buffers the x block).
    x_budget = (6 << 20) if phys_vmem <= (64 << 20) else (12 << 20)
    vmem_limit = int(min((phys_vmem * 3) // 4, 96 << 20))

    TB = _choose_bag_tile(B, n_pad, E, x_budget)
    B_pad = _round_up(B, TB)
    grid = (B_pad // TB,)

    # ---- wrapper-side layout / parameter plumbing (pure plumbing, no compute
    #      hoisting of per-element work) ----
    # TODO(synk): for small non-128-multiple E, repack x toward a 128-lane-dense
    # layout to cut lane-padding on the input DMA (mostly matters on v5e).
    xp = x
    if B_pad != B or n_pad != N:
        xp = jnp.pad(x, ((0, B_pad - B), (0, n_pad - N), (0, 0)))
    lens = bag_lens.astype(jnp.int32)
    if B_pad != B:
        lens = jnp.pad(lens, (0, B_pad - B))       # padded bags -> length 0
    lens2 = lens.reshape(B_pad, 1)

    wuv = jnp.concatenate([wu, wv], axis=1)              # (128, 256)  [U | V]
    buv = jnp.concatenate([bu, bv], axis=1)              # (1, 256)
    w2uv = jnp.concatenate([w2, w2 @ wuv], axis=1)       # (256, 384)  [h | U | V]
    b2uv = jnp.concatenate([b2, b2 @ wuv + buv], axis=1)  # (1, 384)
    wa3 = wa.reshape(1, 1, hd).astype(jnp.float32)
    wo_p = wo if out_p == out_dim else jnp.pad(wo, ((0, 0), (0, out_p - out_dim)))

    # bf16 matmul operands (f32 accumulation inside the kernel); biases stay f32
    w1b = w1.astype(jnp.bfloat16)
    w2uvb = w2uv.astype(jnp.bfloat16)
    wob = wo_p.astype(jnp.bfloat16)
    b1f = b1.astype(jnp.float32)
    b2uvf = b2uv.astype(jnp.float32)

    kernel = _make_kernel(N, hd)

    def call(single_buffer_consts):
        def const_spec(a):
            imap = lambda g: (0,) * a.ndim
            if single_buffer_consts:
                try:   # grid-invariant operands: no need to double-buffer them
                    return pl.BlockSpec(a.shape, imap, pipeline_mode=pl.Buffered(1))
                except TypeError:
                    pass
            return pl.BlockSpec(a.shape, imap)

        grid_spec = pltpu.PrefetchScalarGridSpec(
            num_scalar_prefetch=0,
            grid=grid,
            in_specs=[
                pl.BlockSpec((TB, 1), lambda g: (g, 0)),             # bag lengths
                pl.BlockSpec((TB, n_pad, E), lambda g: (g, 0, 0)),   # X_e
                const_spec(w1b), const_spec(b1f),
                const_spec(w2uvb), const_spec(b2uvf),
                const_spec(wa3), const_spec(wob),
            ],
            out_specs=(
                pl.BlockSpec((TB, out_p), lambda g: (g, 0)),
                pl.BlockSpec((TB, n_pad), lambda g: (g, 0)),
                pl.BlockSpec((TB, hd), lambda g: (g, 0)),
            ),
        )
        return pl.pallas_call(
            kernel,
            grid_spec=grid_spec,
            out_shape=(
                jax.ShapeDtypeStruct((B_pad, out_p), jnp.float32),
                jax.ShapeDtypeStruct((B_pad, n_pad), jnp.float32),
                jax.ShapeDtypeStruct((B_pad, hd), jnp.float32),
            ),
            compiler_params=pltpu.CompilerParams(
                dimension_semantics=("parallel",),
                vmem_limit_bytes=vmem_limit),
        )(lens2, xp, w1b, b1f, w2uvb, b2uvf, wa3, wob)

    try:
        out_full, att_full, atth_full = call(True)
    except Exception:   # fall back if Buffered(1) single-buffering is unsupported
        out_full, att_full, atth_full = call(False)

    output = out_full[:B, :out_dim]      # (B, out_dim)  == fc_out(att_H).squeeze(1)
    att_r = att_full[:B, :N]             # (B, N)        == squeeze(att, dim=1)
    att_H = atth_full[:B][:, None, :]    # (B, 1, 128)   matches torch's att_H
    return output, att_r, att_H


def init_params(key, embedding_dim, output_dim):
    att_w = [256, 128]
    ks = jax.random.split(key, 8)
    s = 0.05
    w1 = s * jax.random.normal(ks[0], (embedding_dim, att_w[0]), jnp.float32)
    b1 = s * jax.random.normal(ks[1], (1, att_w[0]), jnp.float32)
    w2 = s * jax.random.normal(ks[2], (att_w[0], att_w[1]), jnp.float32)
    b2 = s * jax.random.normal(ks[3], (1, att_w[1]), jnp.float32)
    wu = s * jax.random.normal(ks[4], (att_w[1], att_w[1]), jnp.float32)
    bu = s * jax.random.normal(ks[5], (1, att_w[1]), jnp.float32)
    wv = s * jax.random.normal(ks[6], (att_w[1], att_w[1]), jnp.float32)
    bv = s * jax.random.normal(ks[7], (1, att_w[1]), jnp.float32)
    k2 = jax.random.split(jax.random.fold_in(key, 123), 2)
    wa = s * jax.random.normal(k2[0], (1, att_w[1]), jnp.float32)           # attention (no bias)
    wo = s * jax.random.normal(k2[1], (att_w[1], output_dim), jnp.float32)  # fc_out^T (no bias)
    return (w1, b1, w2, b2, wu, bu, wv, bv, wa, wo)


def reference_forward(x, bag_lens, params):
    (w1, b1, w2, b2, wu, bu, wv, bv, wa, wo) = params
    h = jnp.maximum(x @ w1 + b1, 0.0)
    h = h @ w2 + b2
    u = jnp.tanh(h @ wu + bu)
    v = jax.nn.sigmoid(h @ wv + bv)
    logits = jnp.sum((u * v) * wa, axis=-1)                # (B, N)
    att = jax.nn.softmax(logits, axis=-1)
    mask = (jnp.arange(x.shape[1])[None, :] < bag_lens[:, None]).astype(att.dtype)
    att = att * mask
    att_H = jnp.einsum("bn,bnd->bd", att, h)
    out = att_H @ wo
    return out, att, att_H[:, None, :]


if __name__ == "__main__":
    B, N, E, OUT = 2, 8, 32, 4
    key = jax.random.PRNGKey(0)
    kx, kp = jax.random.split(key)
    x = jax.random.normal(kx, (B, N, E), jnp.float32)
    bag_lens = jnp.array([5, 8], dtype=jnp.int32)
    params = init_params(kp, E, OUT)

    out, att_r, att_H = gated_attention_pool(x, bag_lens, params)
    jax.block_until_ready((out, att_r, att_H))

    ref_out, ref_att, ref_att_H = reference_forward(x, bag_lens, params)
    assert out.shape == (B, OUT) and att_r.shape == (B, N) and att_H.shape == (B, 1, 128)
    # bf16 matmul operands (f32 accumulation) -> looser-than-f32 tolerance
    assert jnp.allclose(out, ref_out, atol=2e-2, rtol=2e-2)
    assert jnp.allclose(att_r, ref_att, atol=2e-2, rtol=2e-2)
    assert jnp.allclose(att_H, ref_att_H, atol=2e-2, rtol=2e-2)

    print("KERNEL_OK")
</pallas_src>

<mosaic_0001>
module attributes {stable_mosaic.version = 11 : i64} {
  func.func @kernel(%arg0: i32, %arg1: memref<2x1xi32, #tpu.memory_space<vmem>>, %arg2: memref<2x8x32xf32, #tpu.memory_space<vmem>>, %arg3: memref<32x256xbf16, #tpu.memory_space<vmem>>, %arg4: memref<1x256xf32, #tpu.memory_space<vmem>>, %arg5: memref<256x384xbf16, #tpu.memory_space<vmem>>, %arg6: memref<1x384xf32, #tpu.memory_space<vmem>>, %arg7: memref<1x1x128xf32, #tpu.memory_space<vmem>>, %arg8: memref<128x128xbf16, #tpu.memory_space<vmem>>, %arg9: memref<2x128xf32, #tpu.memory_space<vmem>>, %arg10: memref<2x8xf32, #tpu.memory_space<vmem>>, %arg11: memref<2x128xf32, #tpu.memory_space<vmem>>) attributes {dimension_semantics = [#tpu.dimension_semantics<parallel>], iteration_bounds = array<i64: 1>, scalar_prefetch = 0 : i64, scratch_operands = 0 : i64, tpu.core_type = #tpu.core_type<tc>, window_params = [{transform_indices = @transform_0, window_bounds = array<i64: 2, 1>}, {transform_indices = @transform_1, window_bounds = array<i64: 2, 8, 32>}, {pipeline_mode = #tpu.pipeline_mode<synchronous>, transform_indices = @transform_2, window_bounds = array<i64: 32, 256>}, {pipeline_mode = #tpu.pipeline_mode<synchronous>, transform_indices = @transform_3, window_bounds = array<i64: 1, 256>}, {pipeline_mode = #tpu.pipeline_mode<synchronous>, transform_indices = @transform_4, window_bounds = array<i64: 256, 384>}, {pipeline_mode = #tpu.pipeline_mode<synchronous>, transform_indices = @transform_5, window_bounds = array<i64: 1, 384>}, {pipeline_mode = #tpu.pipeline_mode<synchronous>, transform_indices = @transform_6, window_bounds = array<i64: 1, 1, 128>}, {pipeline_mode = #tpu.pipeline_mode<synchronous>, transform_indices = @transform_7, window_bounds = array<i64: 128, 128>}, {transform_indices = @transform_8, window_bounds = array<i64: 2, 128>}, {transform_indices = @transform_9, window_bounds = array<i64: 2, 8>}, {transform_indices = @transform_10, window_bounds = array<i64: 2, 128>}]} {
    %c0 = arith.constant 0 : index
    %c0_0 = arith.constant 0 : index
    %c0_1 = arith.constant 0 : index
    %0 = vector.load %arg2[%c0, %c0_0, %c0_1] : memref<2x8x32xf32, #tpu.memory_space<vmem>>, vector<2x8x32xf32>
    %1 = vector.shape_cast %0 : vector<2x8x32xf32> to vector<16x32xf32>
    %2 = arith.truncf %1 : vector<16x32xf32> to vector<16x32xbf16>
    %c0_2 = arith.constant 0 : index
    %c0_3 = arith.constant 0 : index
    %3 = vector.load %arg3[%c0_2, %c0_3] : memref<32x256xbf16, #tpu.memory_space<vmem>>, vector<32x256xbf16>
    %cst = arith.constant dense<0.000000e+00> : vector<16x256xf32>
    %4 = tpu.matmul %2, %3, %cst {dimension_numbers = #tpu.dot_dimension_numbers<[1], [0], [0], [1], [0, 0, 1, 1], [], []>} : vector<16x32xbf16>, vector<32x256xbf16>, vector<16x256xf32> -> vector<16x256xf32>
    %c0_4 = arith.constant 0 : index
    %c0_5 = arith.constant 0 : index
    %5 = vector.load %arg4[%c0_4, %c0_5] : memref<1x256xf32, #tpu.memory_space<vmem>>, vector<1x256xf32>
    %6 = vector.broadcast %5 : vector<1x256xf32> to vector<16x256xf32>
    %7 = arith.addf %4, %6 : vector<16x256xf32>
    %cst_6 = arith.constant 0.000000e+00 : f32
    %8 = vector.broadcast %cst_6 : f32 to vector<16x256xf32>
    %9 = arith.maximumf %7, %8 : vector<16x256xf32>
    %10 = arith.truncf %9 : vector<16x256xf32> to vector<16x256xbf16>
    %c0_7 = arith.constant 0 : index
    %c0_8 = arith.constant 0 : index
    %11 = vector.load %arg5[%c0_7, %c0_8] : memref<256x384xbf16, #tpu.memory_space<vmem>>, vector<256x384xbf16>
    %cst_9 = arith.constant dense<0.000000e+00> : vector<16x384xf32>
    %12 = tpu.matmul %10, %11, %cst_9 {dimension_numbers = #tpu.dot_dimension_numbers<[1], [0], [0], [1], [0, 0, 1, 1], [], []>} : vector<16x256xbf16>, vector<256x384xbf16>, vector<16x384xf32> -> vector<16x384xf32>
    %c0_10 = arith.constant 0 : index
    %c0_11 = arith.constant 0 : index
    %13 = vector.load %arg6[%c0_10, %c0_11] : memref<1x384xf32, #tpu.memory_space<vmem>>, vector<1x384xf32>
    %14 = vector.broadcast %13 : vector<1x384xf32> to vector<16x384xf32>
    %15 = arith.addf %12, %14 : vector<16x384xf32>
    %16 = vector.extract_strided_slice %15 {offsets = [0, 0], sizes = [16, 128], strides = [1, 1]} : vector<16x384xf32> to vector<16x128xf32>
    %17 = vector.extract_strided_slice %15 {offsets = [0, 128], sizes = [16, 128], strides = [1, 1]} : vector<16x384xf32> to vector<16x128xf32>
    %18 = math.tanh %17 : vector<16x128xf32>
    %19 = vector.extract_strided_slice %15 {offsets = [0, 256], sizes = [16, 128], strides = [1, 1]} : vector<16x384xf32> to vector<16x128xf32>
    %20 = arith.negf %19 : vector<16x128xf32>
    %21 = math.exp %20 : vector<16x128xf32>
    %cst_12 = arith.constant 1.000000e+00 : f32
    %22 = vector.broadcast %cst_12 : f32 to vector<16x128xf32>
    %23 = arith.addf %22, %21 : vector<16x128xf32>
    %24 = arith.divf %22, %23 : vector<16x128xf32>
    %25 = arith.mulf %18, %24 : vector<16x128xf32>
    %26 = vector.shape_cast %25 : vector<16x128xf32> to vector<2x8x128xf32>
    %c0_13 = arith.constant 0 : index
    %c0_14 = arith.constant 0 : index
    %c0_15 = arith.constant 0 : index
    %27 = vector.load %arg7[%c0_13, %c0_14, %c0_15] : memref<1x1x128xf32, #tpu.memory_space<vmem>>, vector<1x1x128xf32>
    %28 = vector.broadcast %27 : vector<1x1x128xf32> to vector<2x8x128xf32>
    %29 = arith.mulf %26, %28 : vector<2x8x128xf32>
    %cst_16 = arith.constant dense<0.000000e+00> : vector<2x8xf32>
    %30 = vector.multi_reduction <add>, %29, %cst_16 [2] : vector<2x8x128xf32> to vector<2x8xf32>
    %cst_17 = arith.constant dense<0xFF800000> : vector<2xf32>
    %31 = vector.multi_reduction <maximumf>, %30, %cst_17 [1] : vector<2x8xf32> to vector<2xf32>
    %32 = vector.shape_cast %31 : vector<2xf32> to vector<2x1xf32>
    %33 = vector.broadcast %32 : vector<2x1xf32> to vector<2x8xf32>
    %34 = arith.subf %30, %33 : vector<2x8xf32>
    %35 = math.exp %34 : vector<2x8xf32>
    %cst_18 = arith.constant dense<0.000000e+00> : vector<2xf32>
    %36 = vector.multi_reduction <add>, %35, %cst_18 [1] : vector<2x8xf32> to vector<2xf32>
    %37 = vector.shape_cast %36 : vector<2xf32> to vector<2x1xf32>
    %38 = tpu.reciprocal %37 {approx = true} : vector<2x1xf32> -> vector<2x1xf32>
    %39 = vector.broadcast %38 : vector<2x1xf32> to vector<2x8xf32>
    %40 = arith.mulf %35, %39 : vector<2x8xf32>
    %41 = tpu.iota {dimensions = array<i32: 1>} : vector<2x8xi32>
    %c0_19 = arith.constant 0 : index
    %c0_20 = arith.constant 0 : index
    %42 = vector.load %arg1[%c0_19, %c0_20] : memref<2x1xi32, #tpu.memory_space<vmem>>, vector<2x1xi32>
    %43 = vector.broadcast %42 : vector<2x1xi32> to vector<2x8xi32>
    %44 = arith.cmpi slt, %41, %43 : vector<2x8xi32>
    %45 = arith.extui %44 : vector<2x8xi1> to vector<2x8xi32>
    %46 = arith.sitofp %45 : vector<2x8xi32> to vector<2x8xf32>
    %47 = arith.mulf %40, %46 : vector<2x8xf32>
    %48 = vector.shape_cast %16 : vector<16x128xf32> to vector<2x8x128xf32>
    %49 = arith.truncf %48 : vector<2x8x128xf32> to vector<2x8x128xbf16>
    %50 = vector.shape_cast %47 : vector<2x8xf32> to vector<2x1x8xf32>
    %51 = arith.truncf %50 : vector<2x1x8xf32> to vector<2x1x8xbf16>
    "tpu.trace_start"() <{level = 10 : i32, message = "bqn,bnh->bqh"}> : () -> ()
    %cst_21 = arith.constant dense<0.000000e+00> : vector<2x1x128xf32>
    %52 = tpu.matmul %51, %49, %cst_21 {dimension_numbers = #tpu.dot_dimension_numbers<[2], [1], [1], [2], [0, 0, 0, 1, 1, 2], [0], [0]>} : vector<2x1x8xbf16>, vector<2x8x128xbf16>, vector<2x1x128xf32> -> vector<2x1x128xf32>
    "tpu.trace_stop"() : () -> ()
    %53 = vector.shape_cast %52 : vector<2x1x128xf32> to vector<2x128xf32>
    %54 = arith.truncf %53 : vector<2x128xf32> to vector<2x128xbf16>
    %c0_22 = arith.constant 0 : index
    %c0_23 = arith.constant 0 : index
    %55 = vector.load %arg8[%c0_22, %c0_23] : memref<128x128xbf16, #tpu.memory_space<vmem>>, vector<128x128xbf16>
    %cst_24 = arith.constant dense<0.000000e+00> : vector<2x128xf32>
    %56 = tpu.matmul %54, %55, %cst_24 {dimension_numbers = #tpu.dot_dimension_numbers<[1], [0], [0], [1], [0, 0, 1, 1], [], []>} : vector<2x128xbf16>, vector<128x128xbf16>, vector<2x128xf32> -> vector<2x128xf32>
    %c0_25 = arith.constant 0 : index
    %c0_26 = arith.constant 0 : index
    %57 = vector.load %arg9[%c0_25, %c0_26] : memref<2x128xf32, #tpu.memory_space<vmem>>, vector<2x128xf32>
    tpu.vector_store %arg9[%c0_25, %c0_26], %56 {strides = array<i32>} : memref<2x128xf32, #tpu.memory_space<vmem>>, vector<2x128xf32>,
    %c0_27 = arith.constant 0 : index
    %c0_28 = arith.constant 0 : index
    %58 = vector.load %arg10[%c0_27, %c0_28] : memref<2x8xf32, #tpu.memory_space<vmem>>, vector<2x8xf32>
    tpu.vector_store %arg10[%c0_27, %c0_28], %47 {strides = array<i32>} : memref<2x8xf32, #tpu.memory_space<vmem>>, vector<2x8xf32>,
    %c0_29 = arith.constant 0 : index
    %c0_30 = arith.constant 0 : index
    %59 = vector.load %arg11[%c0_29, %c0_30] : memref<2x128xf32, #tpu.memory_space<vmem>>, vector<2x128xf32>
    tpu.vector_store %arg11[%c0_29, %c0_30], %53 {strides = array<i32>} : memref<2x128xf32, #tpu.memory_space<vmem>>, vector<2x128xf32>,
    return
  }
  func.func @transform_0(%arg0: i32) -> (i32, i32) {
    %c0_i32 = arith.constant 0 : i32
    %c0_i32_0 = arith.constant 0 : i32
    return %arg0, %c0_i32 : i32, i32
  }
  func.func @transform_1(%arg0: i32) -> (i32, i32, i32) {
    %c0_i32 = arith.constant 0 : i32
    %c0_i32_0 = arith.constant 0 : i32
    %c0_i32_1 = arith.constant 0 : i32
    return %arg0, %c0_i32, %c0_i32_0 : i32, i32, i32
  }
  func.func @transform_2(%arg0: i32) -> (i32, i32) {
    %c0_i32 = arith.constant 0 : i32
    %c0_i32_0 = arith.constant 0 : i32
    %c0_i32_1 = arith.constant 0 : i32
    return %c0_i32, %c0_i32_0 : i32, i32
  }
  func.func @transform_3(%arg0: i32) -> (i32, i32) {
    %c0_i32 = arith.constant 0 : i32
    %c0_i32_0 = arith.constant 0 : i32
    %c0_i32_1 = arith.constant 0 : i32
    return %c0_i32, %c0_i32_0 : i32, i32
  }
  func.func @transform_4(%arg0: i32) -> (i32, i32) {
    %c0_i32 = arith.constant 0 : i32
    %c0_i32_0 = arith.constant 0 : i32
    %c0_i32_1 = arith.constant 0 : i32
    return %c0_i32, %c0_i32_0 : i32, i32
  }
  func.func @transform_5(%arg0: i32) -> (i32, i32) {
    %c0_i32 = arith.constant 0 : i32
    %c0_i32_0 = arith.constant 0 : i32
    %c0_i32_1 = arith.constant 0 : i32
    return %c0_i32, %c0_i32_0 : i32, i32
  }
  func.func @transform_6(%arg0: i32) -> (i32, i32, i32) {
    %c0_i32 = arith.constant 0 : i32
    %c0_i32_0 = arith.constant 0 : i32
    %c0_i32_1 = arith.constant 0 : i32
    %c0_i32_2 = arith.constant 0 : i32
    return %c0_i32, %c0_i32_0, %c0_i32_1 : i32, i32, i32
  }
  func.func @transform_7(%arg0: i32) -> (i32, i32) {
    %c0_i32 = arith.constant 0 : i32
    %c0_i32_0 = arith.constant 0 : i32
    %c0_i32_1 = arith.constant 0 : i32
    return %c0_i32, %c0_i32_0 : i32, i32
  }
  func.func @transform_8(%arg0: i32) -> (i32, i32) {
    %c0_i32 = arith.constant 0 : i32
    %c0_i32_0 = arith.constant 0 : i32
    return %arg0, %c0_i32 : i32, i32
  }
  func.func @transform_9(%arg0: i32) -> (i32, i32) {
    %c0_i32 = arith.constant 0 : i32
    %c0_i32_0 = arith.constant 0 : i32
    return %arg0, %c0_i32 : i32, i32
  }
  func.func @transform_10(%arg0: i32) -> (i32, i32) {
    %c0_i32 = arith.constant 0 : i32
    %c0_i32_0 = arith.constant 0 : i32
    return %arg0, %c0_i32 : i32, i32
  }
}

module attributes {stable_mosaic.version = 11 : i64} {
  func.func @kernel(%arg0: i32, %arg1: memref<2x1xi32, #tpu.memory_space<vmem>>, %arg2: memref<2x8x32xf32, #tpu.memory_space<vmem>>, %arg3: memref<32x256xbf16, #tpu.memory_space<vmem>>, %arg4: memref<1x256xf32, #tpu.memory_space<vmem>>, %arg5: memref<256x384xbf16, #tpu.memory_space<vmem>>, %arg6: memref<1x384xf32, #tpu.memory_space<vmem>>, %arg7: memref<1x1x128xf32, #tpu.memory_space<vmem>>, %arg8: memref<128x128xbf16, #tpu.memory_space<vmem>>, %arg9: memref<2x128xf32, #tpu.memory_space<vmem>>, %arg10: memref<2x8xf32, #tpu.memory_space<vmem>>, %arg11: memref<2x128xf32, #tpu.memory_space<vmem>>) attributes {dimension_semantics = [#tpu.dimension_semantics<parallel>], iteration_bounds = array<i64: 1>, scalar_prefetch = 0 : i64, scratch_operands = 0 : i64, tpu.core_type = #tpu.core_type<tc>, window_params = [{transform_indices = @transform_0, window_bounds = array<i64: 2, 1>}, {transform_indices = @transform_1, window_bounds = array<i64: 2, 8, 32>}, {pipeline_mode = #tpu.pipeline_mode<synchronous>, transform_indices = @transform_2, window_bounds = array<i64: 32, 256>}, {pipeline_mode = #tpu.pipeline_mode<synchronous>, transform_indices = @transform_3, window_bounds = array<i64: 1, 256>}, {pipeline_mode = #tpu.pipeline_mode<synchronous>, transform_indices = @transform_4, window_bounds = array<i64: 256, 384>}, {pipeline_mode = #tpu.pipeline_mode<synchronous>, transform_indices = @transform_5, window_bounds = array<i64: 1, 384>}, {pipeline_mode = #tpu.pipeline_mode<synchronous>, transform_indices = @transform_6, window_bounds = array<i64: 1, 1, 128>}, {pipeline_mode = #tpu.pipeline_mode<synchronous>, transform_indices = @transform_7, window_bounds = array<i64: 128, 128>}, {transform_indices = @transform_8, window_bounds = array<i64: 2, 128>}, {transform_indices = @transform_9, window_bounds = array<i64: 2, 8>}, {transform_indices = @transform_10, window_bounds = array<i64: 2, 128>}]} {
    %c0 = arith.constant 0 : index
    %c0_0 = arith.constant 0 : index
    %c0_1 = arith.constant 0 : index
    %0 = vector.load %arg2[%c0, %c0_0, %c0_1] : memref<2x8x32xf32, #tpu.memory_space<vmem>>, vector<2x8x32xf32>
    %1 = vector.shape_cast %0 : vector<2x8x32xf32> to vector<16x32xf32>
    %2 = arith.truncf %1 : vector<16x32xf32> to vector<16x32xbf16>
    %c0_2 = arith.constant 0 : index
    %c0_3 = arith.constant 0 : index
    %3 = vector.load %arg3[%c0_2, %c0_3] : memref<32x256xbf16, #tpu.memory_space<vmem>>, vector<32x256xbf16>
    %cst = arith.constant dense<0.000000e+00> : vector<16x256xf32>
    %4 = tpu.matmul %2, %3, %cst {dimension_numbers = #tpu.dot_dimension_numbers<[1], [0], [0], [1], [0, 0, 1, 1], [], []>} : vector<16x32xbf16>, vector<32x256xbf16>, vector<16x256xf32> -> vector<16x256xf32>
    %c0_4 = arith.constant 0 : index
    %c0_5 = arith.constant 0 : index
    %5 = vector.load %arg4[%c0_4, %c0_5] : memref<1x256xf32, #tpu.memory_space<vmem>>, vector<1x256xf32>
    %6 = vector.broadcast %5 : vector<1x256xf32> to vector<16x256xf32>
    %7 = arith.addf %4, %6 : vector<16x256xf32>
    %cst_6 = arith.constant 0.000000e+00 : f32
    %8 = vector.broadcast %cst_6 : f32 to vector<16x256xf32>
    %9 = arith.maximumf %7, %8 : vector<16x256xf32>
    %10 = arith.truncf %9 : vector<16x256xf32> to vector<16x256xbf16>
    %c0_7 = arith.constant 0 : index
    %c0_8 = arith.constant 0 : index
    %11 = vector.load %arg5[%c0_7, %c0_8] : memref<256x384xbf16, #tpu.memory_space<vmem>>, vector<256x384xbf16>
    %cst_9 = arith.constant dense<0.000000e+00> : vector<16x384xf32>
    %12 = tpu.matmul %10, %11, %cst_9 {dimension_numbers = #tpu.dot_dimension_numbers<[1], [0], [0], [1], [0, 0, 1, 1], [], []>} : vector<16x256xbf16>, vector<256x384xbf16>, vector<16x384xf32> -> vector<16x384xf32>
    %c0_10 = arith.constant 0 : index
    %c0_11 = arith.constant 0 : index
    %13 = vector.load %arg6[%c0_10, %c0_11] : memref<1x384xf32, #tpu.memory_space<vmem>>, vector<1x384xf32>
    %14 = vector.broadcast %13 : vector<1x384xf32> to vector<16x384xf32>
    %15 = arith.addf %12, %14 : vector<16x384xf32>
    %16 = vector.extract_strided_slice %15 {offsets = [0, 0], sizes = [16, 128], strides = [1, 1]} : vector<16x384xf32> to vector<16x128xf32>
    %17 = vector.extract_strided_slice %15 {offsets = [0, 128], sizes = [16, 128], strides = [1, 1]} : vector<16x384xf32> to vector<16x128xf32>
    %18 = math.tanh %17 : vector<16x128xf32>
    %19 = vector.extract_strided_slice %15 {offsets = [0, 256], sizes = [16, 128], strides = [1, 1]} : vector<16x384xf32> to vector<16x128xf32>
    %20 = arith.negf %19 : vector<16x128xf32>
    %21 = math.exp %20 : vector<16x128xf32>
    %cst_12 = arith.constant 1.000000e+00 : f32
    %22 = vector.broadcast %cst_12 : f32 to vector<16x128xf32>
    %23 = arith.addf %22, %21 : vector<16x128xf32>
    %24 = arith.divf %22, %23 : vector<16x128xf32>
    %25 = arith.mulf %18, %24 : vector<16x128xf32>
    %26 = vector.shape_cast %25 : vector<16x128xf32> to vector<2x8x128xf32>
    %c0_13 = arith.constant 0 : index
    %c0_14 = arith.constant 0 : index
    %c0_15 = arith.constant 0 : index
    %27 = vector.load %arg7[%c0_13, %c0_14, %c0_15] : memref<1x1x128xf32, #tpu.memory_space<vmem>>, vector<1x1x128xf32>
    %28 = vector.broadcast %27 : vector<1x1x128xf32> to vector<2x8x128xf32>
    %29 = arith.mulf %26, %28 : vector<2x8x128xf32>
    %cst_16 = arith.constant dense<0.000000e+00> : vector<2x8xf32>
    %30 = vector.multi_reduction <add>, %29, %cst_16 [2] : vector<2x8x128xf32> to vector<2x8xf32>
    %cst_17 = arith.constant dense<0xFF800000> : vector<2xf32>
    %31 = vector.multi_reduction <maximumf>, %30, %cst_17 [1] : vector<2x8xf32> to vector<2xf32>
    %32 = vector.shape_cast %31 : vector<2xf32> to vector<2x1xf32>
    %33 = vector.broadcast %32 : vector<2x1xf32> to vector<2x8xf32>
    %34 = arith.subf %30, %33 : vector<2x8xf32>
    %35 = math.exp %34 : vector<2x8xf32>
    %cst_18 = arith.constant dense<0.000000e+00> : vector<2xf32>
    %36 = vector.multi_reduction <add>, %35, %cst_18 [1] : vector<2x8xf32> to vector<2xf32>
    %37 = vector.shape_cast %36 : vector<2xf32> to vector<2x1xf32>
    %38 = tpu.reciprocal %37 {approx = true} : vector<2x1xf32> -> vector<2x1xf32>
    %39 = vector.broadcast %38 : vector<2x1xf32> to vector<2x8xf32>
    %40 = arith.mulf %35, %39 : vector<2x8xf32>
    %41 = tpu.iota {dimensions = array<i32: 1>} : vector<2x8xi32>
    %c0_19 = arith.constant 0 : index
    %c0_20 = arith.constant 0 : index
    %42 = vector.load %arg1[%c0_19, %c0_20] : memref<2x1xi32, #tpu.memory_space<vmem>>, vector<2x1xi32>
    %43 = vector.broadcast %42 : vector<2x1xi32> to vector<2x8xi32>
    %44 = arith.cmpi slt, %41, %43 : vector<2x8xi32>
    %45 = arith.extui %44 : vector<2x8xi1> to vector<2x8xi32>
    %46 = arith.sitofp %45 : vector<2x8xi32> to vector<2x8xf32>
    %47 = arith.mulf %40, %46 : vector<2x8xf32>
    %48 = vector.shape_cast %16 : vector<16x128xf32> to vector<2x8x128xf32>
    %49 = arith.truncf %48 : vector<2x8x128xf32> to vector<2x8x128xbf16>
    %50 = vector.shape_cast %47 : vector<2x8xf32> to vector<2x1x8xf32>
    %51 = arith.truncf %50 : vector<2x1x8xf32> to vector<2x1x8xbf16>
    "tpu.trace_start"() <{level = 10 : i32, message = "bqn,bnh->bqh"}> : () -> ()
    %cst_21 = arith.constant dense<0.000000e+00> : vector<2x1x128xf32>
    %52 = tpu.matmul %51, %49, %cst_21 {dimension_numbers = #tpu.dot_dimension_numbers<[2], [1], [1], [2], [0, 0, 0, 1, 1, 2], [0], [0]>} : vector<2x1x8xbf16>, vector<2x8x128xbf16>, vector<2x1x128xf32> -> vector<2x1x128xf32>
    "tpu.trace_stop"() : () -> ()
    %53 = vector.shape_cast %52 : vector<2x1x128xf32> to vector<2x128xf32>
    %54 = arith.truncf %53 : vector<2x128xf32> to vector<2x128xbf16>
    %c0_22 = arith.constant 0 : index
    %c0_23 = arith.constant 0 : index
    %55 = vector.load %arg8[%c0_22, %c0_23] : memref<128x128xbf16, #tpu.memory_space<vmem>>, vector<128x128xbf16>
    %cst_24 = arith.constant dense<0.000000e+00> : vector<2x128xf32>
    %56 = tpu.matmul %54, %55, %cst_24 {dimension_numbers = #tpu.dot_dimension_numbers<[1], [0], [0], [1], [0, 0, 1, 1], [], []>} : vector<2x128xbf16>, vector<128x128xbf16>, vector<2x128xf32> -> vector<2x128xf32>
    %c0_25 = arith.constant 0 : index
    %c0_26 = arith.constant 0 : index
    %57 = vector.load %arg9[%c0_25, %c0_26] : memref<2x128xf32, #tpu.memory_space<vmem>>, vector<2x128xf32>
    tpu.vector_store %arg9[%c0_25, %c0_26], %56 {strides = array<i32>} : memref<2x128xf32, #tpu.memory_space<vmem>>, vector<2x128xf32>,
    %c0_27 = arith.constant 0 : index
    %c0_28 = arith.constant 0 : index
    %58 = vector.load %arg10[%c0_27, %c0_28] : memref<2x8xf32, #tpu.memory_space<vmem>>, vector<2x8xf32>
    tpu.vector_store %arg10[%c0_27, %c0_28], %47 {strides = array<i32>} : memref<2x8xf32, #tpu.memory_space<vmem>>, vector<2x8xf32>,
    %c0_29 = arith.constant 0 : index
    %c0_30 = arith.constant 0 : index
    %59 = vector.load %arg11[%c0_29, %c0_30] : memref<2x128xf32, #tpu.memory_space<vmem>>, vector<2x128xf32>
    tpu.vector_store %arg11[%c0_29, %c0_30], %53 {strides = array<i32>} : memref<2x128xf32, #tpu.memory_space<vmem>>, vector<2x128xf32>,
    return
  }
  func.func @transform_0(%arg0: i32) -> (i32, i32) {
    %c0_i32 = arith.constant 0 : i32
    %c0_i32_0 = arith.constant 0 : i32
    return %arg0, %c0_i32 : i32, i32
  }
  func.func @transform_1(%arg0: i32) -> (i32, i32, i32) {
    %c0_i32 = arith.constant 0 : i32
    %c0_i32_0 = arith.constant 0 : i32
    %c0_i32_1 = arith.constant 0 : i32
    return %arg0, %c0_i32, %c0_i32_0 : i32, i32, i32
  }
  func.func @transform_2(%arg0: i32) -> (i32, i32) {
    %c0_i32 = arith.constant 0 : i32
    %c0_i32_0 = arith.constant 0 : i32
    %c0_i32_1 = arith.constant 0 : i32
    return %c0_i32, %c0_i32_0 : i32, i32
  }
  func.func @transform_3(%arg0: i32) -> (i32, i32) {
    %c0_i32 = arith.constant 0 : i32
    %c0_i32_0 = arith.constant 0 : i32
    %c0_i32_1 = arith.constant 0 : i32
    return %c0_i32, %c0_i32_0 : i32, i32
  }
  func.func @transform_4(%arg0: i32) -> (i32, i32) {
    %c0_i32 = arith.constant 0 : i32
    %c0_i32_0 = arith.constant 0 : i32
    %c0_i32_1 = arith.constant 0 : i32
    return %c0_i32, %c0_i32_0 : i32, i32
  }
  func.func @transform_5(%arg0: i32) -> (i32, i32) {
    %c0_i32 = arith.constant 0 : i32
    %c0_i32_0 = arith.constant 0 : i32
    %c0_i32_1 = arith.constant 0 : i32
    return %c0_i32, %c0_i32_0 : i32, i32
  }
  func.func @transform_6(%arg0: i32) -> (i32, i32, i32) {
    %c0_i32 = arith.constant 0 : i32
    %c0_i32_0 = arith.constant 0 : i32
    %c0_i32_1 = arith.constant 0 : i32
    %c0_i32_2 = arith.constant 0 : i32
    return %c0_i32, %c0_i32_0, %c0_i32_1 : i32, i32, i32
  }
  func.func @transform_7(%arg0: i32) -> (i32, i32) {
    %c0_i32 = arith.constant 0 : i32
    %c0_i32_0 = arith.constant 0 : i32
    %c0_i32_1 = arith.constant 0 : i32
    return %c0_i32, %c0_i32_0 : i32, i32
  }
  func.func @transform_8(%arg0: i32) -> (i32, i32) {
    %c0_i32 = arith.constant 0 : i32
    %c0_i32_0 = arith.constant 0 : i32
    return %arg0, %c0_i32 : i32, i32
  }
  func.func @transform_9(%arg0: i32) -> (i32, i32) {
    %c0_i32 = arith.constant 0 : i32
    %c0_i32_0 = arith.constant 0 : i32
    return %arg0, %c0_i32 : i32, i32
  }
  func.func @transform_10(%arg0: i32) -> (i32, i32) {
    %c0_i32 = arith.constant 0 : i32
    %c0_i32_0 = arith.constant 0 : i32
    return %arg0, %c0_i32 : i32, i32
  }
}

</mosaic_0001>

<bundles_post_ra>
// kernel: tpu_custom_call.1
= control target key start
LH: loop header
LB: loop body
LE: loop exit
PB: predicated region body
PF: predicated region fallthrough
CT: control target
= control target key end

     0   :  { %16 = vsyncpa [#allocation3], 0  ;;  %s1679_s0 = inlined_call_operand.vmem [shape: s32[2,1], index: 0, kind: input, shape index: {}]   ;;  %s1680_s1 = inlined_call_operand.hbm [shape: f32[2,8,32], index: 1, kind: input, shape index: {}]   ;;  %s1681_s2 = inlined_call_operand.hbm [shape: bf16[32,256], index: 2, kind: input, shape index: {}]   ;;  %s1682_s3 = inlined_call_operand.vmem [shape: f32[1,256], index: 3, kind: input, shape index: {}]   ;;  %s1683_s4 = inlined_call_operand.hbm [shape: bf16[256,384], index: 4, kind: input, shape index: {}]   ;;  %s1684_s5 = inlined_call_operand.vmem [shape: f32[1,384], index: 5, kind: input, shape index: {}]   ;;  %s1685_s6 = inlined_call_operand.vmem [shape: f32[1,1,128], index: 6, kind: input, shape index: {}]   ;;  %s1686_s7 = inlined_call_operand.hbm [shape: bf16[128,128], index: 7, kind: input, shape index: {}]   ;;  %s1687_s8 = inlined_call_operand.hbm [shape: f32[2,128], index: 8, kind: output, shape index: {0}]   ;;  %s1688_s9 = inlined_call_operand.hbm [shape: f32[2,8], index: 9, kind: output, shape index: {1}]   ;;  %s1689_s10 = inlined_call_operand.hbm [shape: f32[2,128], index: 10, kind: output, shape index: {2}]  }
   0x1   :  { %17 = vsyncpa [#allocation6], 0 }
   0x2   :  { %18 = vsyncpa [#allocation9], 0 }
   0x3   :  { %19 = vsyncpa [#allocation4], 0 }
   0x4   :  { %20 = vsyncpa [#allocation12], 0  ;;  %s1443_s13 = smov [#allocation5]   ;;  %s1444_s15 = smov [#allocation2]  }
   0x5   :  { %s40_s14 = sshll.u32 %s1443_s13, 4  ;;  %s28_s16 = sshll.u32 %s1444_s15, 4  ;;  %s41_s14 = int_to_ptr.vmem [resolvable:$true] %s40_s14  ;;  %s1514_s16 = int_to_ptr.vmem [resolvable:$true] %s28_s16 }
   0x6   :  { %s1279_s19 = scalar_lea.hbm %s1681_s2, 512 }
   0x7   :  { %p1280_p0 = scmp.ne.s32.totalorder %s1681_s2, %s1279_s19  ;;  %p1283_p1 = scmp.lt.u32.totalorder %s1279_s19, %s1681_s2 }
   0x9   :  { %p1285_p2 = pnand %p1283_p1, %p1280_p0 }
   0xb   :  { %1288 = shalt.err (!%p1285_p2)
}
   0xc   :  { %s1289_s24 = scalar_lea.vmem %s41_s14, 512  ;;  %p1294_p4 = scmp.lt.s32.totalorder %s41_s14, %s41_s14 }
   0xd   :  { %p1290_p3 = scmp.ne.s32.totalorder %s41_s14, %s1289_s24  ;;  %p1295_p5 = scmp.lt.s32.totalorder %s1289_s24, %s1289_s24 }
   0xf   :  { %p1296_p6 = por %p1295_p5, %p1294_p4 }
  0x11   :  { %p1297_p7 = pnand %p1296_p6, %p1290_p3 }
  0x13   :  { %1300 = shalt.err (!%p1297_p7)
}
  0x14   :  { %s1445_s25 = smov 128   ;;  %s1446_s26 = smov 8  }
  0x15   :  { %46 = dma.hbm_to_vmem [thread:$0]  %s1681_s2, 512, %s41_s14, [#allocation6], %s1445_s25, %s1445_s25, %s1446_s26  }
  0x16   :  { %s1301_s11 = scalar_lea.hbm %s1680_s1, 256 }
  0x17   :  { %p1302_p8 = scmp.ne.s32.totalorder %s1680_s1, %s1301_s11  ;;  %p1305_p9 = scmp.lt.u32.totalorder %s1301_s11, %s1680_s1 }
  0x19   :  { %p1307_p10 = pnand %p1305_p9, %p1302_p8 }
  0x1b   :  { %1310 = shalt.err (!%p1307_p10)
}
  0x1c   :  { %s1311_s18 = scalar_lea.vmem %s1514_s16, 256  ;;  %p1316_p12 = scmp.lt.s32.totalorder %s1514_s16, %s1514_s16 }
  0x1d   :  { %p1312_p11 = scmp.ne.s32.totalorder %s1514_s16, %s1311_s18  ;;  %p1317_p13 = scmp.lt.s32.totalorder %s1311_s18, %s1311_s18 }
  0x1f   :  { %p1318_p0 = por %p1317_p13, %p1316_p12 }
  0x21   :  { %p1319_p1 = pnand %p1318_p0, %p1312_p11 }
  0x23   :  { %1322 = shalt.err (!%p1319_p1)
}
  0x24   :  { %34 = dma.hbm_to_vmem [thread:$0]  %s1680_s1, 256, %s1514_s16, [#allocation3], %s1445_s25, %s1445_s25, %s1446_s26  }
  0x25   :  { %s1447_s19 = smov [#allocation7]   ;;  %s1323_s23 = scalar_lea.hbm %s1683_s4, 6144 }
  0x26   :  { %s54_s20 = sshll.u32 %s1447_s19, 4  ;;  %p1324_p2 = scmp.ne.s32.totalorder %s1683_s4, %s1323_s23  ;;  %s55_s20 = int_to_ptr.vmem [resolvable:$true] %s54_s20 }
  0x27   :  { %p1327_p3 = scmp.lt.u32.totalorder %s1323_s23, %s1683_s4 }
  0x29   :  { %p1329_p4 = pnand %p1327_p3, %p1324_p2 }
  0x2b   :  { %1332 = shalt.err (!%p1329_p4)
}
  0x2c   :  { %s1333_s30 = scalar_lea.vmem %s55_s20, 6144  ;;  %p1338_p6 = scmp.lt.s32.totalorder %s55_s20, %s55_s20 }
  0x2d   :  { %p1334_p5 = scmp.ne.s32.totalorder %s55_s20, %s1333_s30  ;;  %p1339_p7 = scmp.lt.s32.totalorder %s1333_s30, %s1333_s30 }
  0x2f   :  { %p1340_p8 = por %p1339_p7, %p1338_p6 }
  0x31   :  { %p1341_p9 = pnand %p1340_p8, %p1334_p5 }
  0x33   :  { %1344 = shalt.err (!%p1341_p9)
}
  0x34   :  { %s1448_s1 = smov 192   ;;  %s1449_s16 = smov 12  }
  0x35   :  { %60 = dma.hbm_to_vmem [thread:$0]  %s1683_s4, 6144, %s55_s20, [#allocation6], %s1448_s1, %s1448_s1, %s1449_s16  }
  0x36   :  { %s1450_s11 = smov [#allocation8]   ;;  %s1345_s17 = scalar_lea.hbm %s1686_s7, 1024 }
  0x37   :  { %s70_s12 = sshll.u32 %s1450_s11, 4  ;;  %p1346_p10 = scmp.ne.s32.totalorder %s1686_s7, %s1345_s17  ;;  %s71_s12 = int_to_ptr.vmem [resolvable:$true] %s70_s12 }
  0x38   :  { %p1349_p11 = scmp.lt.u32.totalorder %s1345_s17, %s1686_s7 }
  0x3a   :  { %p1351_p12 = pnand %p1349_p11, %p1346_p10 }
  0x3c   :  { %1354 = shalt.err (!%p1351_p12)
}
  0x3d   :  { %s1355_s21 = scalar_lea.vmem %s71_s12, 1024  ;;  %p1360_p0 = scmp.lt.s32.totalorder %s71_s12, %s71_s12 }
  0x3e   :  { %p1356_p13 = scmp.ne.s32.totalorder %s71_s12, %s1355_s21  ;;  %p1361_p1 = scmp.lt.s32.totalorder %s1355_s21, %s1355_s21 }
  0x40   :  { %p1362_p2 = por %p1361_p1, %p1360_p0 }
  0x42   :  { %p1363_p3 = pnand %p1362_p2, %p1356_p13 }
  0x44   :  { %1366 = shalt.err (!%p1363_p3)
}
  0x45   :  { %s1451_s4 = smov 64   ;;  %s1452_s20 = smov 4  }
  0x46   :  { %76 = dma.hbm_to_vmem [thread:$0]  %s1686_s7, 1024, %s71_s12, [#allocation9], %s1451_s4, %s1451_s4, %s1452_s20  }
  0x47   :  { %1433 = dma.done.wait [#allocation3], 256  }
  0x48   :  { %1434 = vsyncadd [#allocation3], 4294967040 }
  0x49   :  { %1435 = dma.done.wait [#allocation6], 6656  }
  0x4a   :  { %1436 = vsyncadd [#allocation6], 4294960640 }
  0x4b   :  { %1437 = dma.done.wait [#allocation9], 1024  }
  0x4c   :  { %1438 = vsyncadd [#allocation9], 4294966272  ;;  %v1453_v0 = vmov 0   ;;  %v1183_v1 = vld [vmem:[#allocation5 + $0x4] ss:$8 sps:$4 sm:$0xff]   ;;  %v90_v5 = vld [vmem:[#allocation2] sm:$0xff]  ;;  %v99_v56 = vlaneseq }
  0x4d   :  { %165 = vmatprep.mubr.bf16.mxu1 %v1453_v0  ;;  %1182 = vset.pattern.permute.xlu0 %v1453_v0  ;;  %v1185_v2 = vld [vmem:[#allocation5] ss:$8 sps:$4 sm:$0xff]   ;;  %v1186_v3 = vld [vmem:[#allocation5 + $0x14] ss:$8 sps:$4 sm:$0xff]   ;;  %v1188_v4 = vld [vmem:[#allocation5 + $0x10] ss:$8 sps:$4 sm:$0xff]  }
  0x4e   :  { %1181 = vset.pattern.permute.xlu1 %v1453_v0  ;;  %133 = vmatprep.subr.bf16.mxu1 %v1183_v1  ;;  %v91_v6 = vld [vmem:[#allocation2 + $0x8] sm:$0xff]  ;;  %v1191_v7 = vld [vmem:[#allocation7 + $0x4] ss:$12 sps:$4 sm:$0xff]   ;;  %vm129_vm0 = vcmask 261120   ;;  %v1189_v9 = vld [vmem:[#allocation7] ss:$12 sps:$4 sm:$0xff]  }
  0x4f   :  { %134 = vmatpush1.bf16.msra.mxu1 %v1185_v2  ;;  %v92_v8 = vpack.c.bf16 %v91_v6, %v90_v5  ;;  %v1194_v10 = vld [vmem:[#allocation7 + $0x1c] ss:$12 sps:$4 sm:$0xff]   ;;  %v1192_v11 = vld [vmem:[#allocation7 + $0x18] ss:$12 sps:$4 sm:$0xff]   ;;  %v1197_v12 = vld [vmem:[#allocation7 + $0x34] ss:$12 sps:$4 sm:$0xff]  }
  0x50   :  { %135 = vmatprep.subr.bf16.mxu1 %v1186_v3  ;;  %v1195_v13 = vld [vmem:[#allocation7 + $0x30] ss:$12 sps:$4 sm:$0xff]   ;;  %v1200_v14 = vld [vmem:[#allocation7 + $0x4c] ss:$12 sps:$4 sm:$0xff]   ;;  %v1216_v15 = vld [vmem:[#allocation7 + $0xc8] ss:$12 sps:$4 sm:$0xff]  }
  0x51   :  { %v1217_v16 = vld [vmem:[#allocation7 + $0x8] ss:$12 sps:$4 sm:$0xff]   ;;  %v1203_v18 = vld [vmem:[#allocation7 + $0x64] ss:$12 sps:$4 sm:$0xff]   ;;  %1098 = vmatprep.subr.bf16.mxu0 %v1216_v15  ;;  %v1221_v19 = vld [vmem:[#allocation7 + $0xe0] ss:$12 sps:$4 sm:$0xff]  }
  0x52   :  { %v1198_v17 = vld [vmem:[#allocation7 + $0x48] ss:$12 sps:$4 sm:$0xff]   ;;  %1099 = vmatpush3.bf16.msra.mxu0 %v1217_v16  ;;  %v1222_v20 = vld [vmem:[#allocation7 + $0x20] ss:$12 sps:$4 sm:$0xff]   ;;  %v1226_v22 = vld [vmem:[#allocation7 + $0xf8] ss:$12 sps:$4 sm:$0xff]  }
  0x53   :  { %136 = vmatpush1.bf16.msra.mxu1 %v1188_v4  ;;  %v1201_v21 = vld [vmem:[#allocation7 + $0x60] ss:$12 sps:$4 sm:$0xff]   ;;  %1100 = vmatprep.subr.bf16.mxu0 %v1221_v19  ;;  %v1227_v23 = vld [vmem:[#allocation7 + $0x38] ss:$12 sps:$4 sm:$0xff]   ;;  %v1206_v24 = vld [vmem:[#allocation7 + $0x7c] ss:$12 sps:$4 sm:$0xff]  }
  0x54   :  { %519 = vmatprep.subr.bf16.mxu1 %v1191_v7  ;;  %v1204_v25 = vld [vmem:[#allocation7 + $0x78] ss:$12 sps:$4 sm:$0xff]   ;;  %v1231_v26 = vld [vmem:[#allocation7 + $0x110] ss:$12 sps:$4 sm:$0xff]   ;;  %v1209_v28 = vld [vmem:[#allocation7 + $0x94] ss:$12 sps:$4 sm:$0xff]  }
  0x55   :  { %v1232_v27 = vld [vmem:[#allocation7 + $0x50] ss:$12 sps:$4 sm:$0xff]   ;;  %v1236_v29 = vld [vmem:[#allocation7 + $0x128] ss:$12 sps:$4 sm:$0xff]   ;;  %v1212_v31 = vld [vmem:[#allocation7 + $0xac] ss:$12 sps:$4 sm:$0xff]  }
  0x56   :  { %1035 = vmatmul.mubr.msk.bf16.vlgmr.msra.gmra.mrb[0].mxu1 %vm129_vm0, %v92_v8  ;;  %1101 = vmatpush3.bf16.msra.mxu0 %v1222_v20  ;;  %v1207_v30 = vld [vmem:[#allocation7 + $0x90] ss:$12 sps:$4 sm:$0xff]   ;;  %v1237_v32 = vld [vmem:[#allocation7 + $0x68] ss:$12 sps:$4 sm:$0xff]   ;;  %v1241_v33 = vld [vmem:[#allocation7 + $0x140] ss:$12 sps:$4 sm:$0xff]  }
  0x57   :  { %520 = vmatpush1.bf16.msra.mxu1 %v1189_v9  ;;  %1102 = vmatprep.subr.bf16.mxu0 %v1226_v22  ;;  %v1210_v34 = vld [vmem:[#allocation7 + $0xa8] ss:$12 sps:$4 sm:$0xff]   ;;  %v1215_v35 = vld [vmem:[#allocation7 + $0xc4] ss:$12 sps:$4 sm:$0xff]   ;;  %v1213_v36 = vld [vmem:[#allocation7 + $0xc0] ss:$12 sps:$4 sm:$0xff]  }
  0x58   :  { %521 = vmatprep.subr.bf16.mxu1 %v1194_v10  ;;  %v1220_v37 = vld [vmem:[#allocation7 + $0xdc] ss:$12 sps:$4 sm:$0xff]   ;;  %v1218_v38 = vld [vmem:[#allocation7 + $0xd8] ss:$12 sps:$4 sm:$0xff]   ;;  %v1225_v39 = vld [vmem:[#allocation7 + $0xf4] ss:$12 sps:$4 sm:$0xff]  }
  0x59   :  { %v1223_v40 = vld [vmem:[#allocation7 + $0xf0] ss:$12 sps:$4 sm:$0xff]   ;;  %v1230_v41 = vld [vmem:[#allocation7 + $0x10c] ss:$12 sps:$4 sm:$0xff]   ;;  %v1228_v42 = vld [vmem:[#allocation7 + $0x108] ss:$12 sps:$4 sm:$0xff]  }
  0x5a   :  { %1103 = vmatpush3.bf16.msra.mxu0 %v1227_v23  ;;  %v1235_v43 = vld [vmem:[#allocation7 + $0x124] ss:$12 sps:$4 sm:$0xff]   ;;  %v1233_v44 = vld [vmem:[#allocation7 + $0x120] ss:$12 sps:$4 sm:$0xff]   ;;  %v1240_v45 = vld [vmem:[#allocation7 + $0x13c] ss:$12 sps:$4 sm:$0xff]  }
  0x5b   :  { %522 = vmatpush1.bf16.msra.mxu1 %v1192_v11  ;;  %1104 = vmatprep.subr.bf16.mxu0 %v1231_v26  ;;  %v1238_v46 = vld [vmem:[#allocation7 + $0x138] ss:$12 sps:$4 sm:$0xff]   ;;  %v1242_v47 = vld [vmem:[#allocation7 + $0x80] ss:$12 sps:$4 sm:$0xff]   ;;  %v1243_v50 = vld [vmem:[#allocation7 + $0x150] ss:$12 sps:$4 sm:$0xff]  }
  0x5c   :  { %523 = vmatprep.subr.bf16.mxu1 %v1197_v12  ;;  %v1245_v48 = vld [vmem:[#allocation7 + $0x154] ss:$12 sps:$4 sm:$0xff]   ;;  %v1246_v49 = vld [vmem:[#allocation7 + $0x158] ss:$12 sps:$4 sm:$0xff]   ;;  %v1251_v53 = vld [vmem:[#allocation7 + $0x170] ss:$12 sps:$4 sm:$0xff]  }
  0x5d   :  { %v1247_v51 = vld [vmem:[#allocation7 + $0x98] ss:$12 sps:$4 sm:$0xff]   ;;  %v1248_v54 = vld [vmem:[#allocation7 + $0x168] ss:$12 sps:$4 sm:$0xff]   ;;  %v1252_v55 = vld [vmem:[#allocation7 + $0xb0] ss:$12 sps:$4 sm:$0xff]  }
  0x5e   :  { %1105 = vmatpush3.bf16.msra.mxu0 %v1232_v27  ;;  %v1250_v52 = vld [vmem:[#allocation7 + $0x16c] ss:$12 sps:$4 sm:$0xff]   ;;  %v1570_v57 = vshrl.u32 %v99_v56, 7  ;;  %v97_v59 = vld [vmem:[%s1682_s3] sm:$0x3]  ;;  %vm747_vm1 = vcmask 1043456  }
  0x5f   :  { %524 = vmatpush1.bf16.msra.mxu1 %v1195_v13  ;;  %1106 = vmatprep.subr.bf16.mxu0 %v1236_v29  ;;  %v1454_v13 = vmov 0.0   ;;  %vm644_vm2 = vcmask 1041409   ;;  %vm647_vm3 = vcmask 58368   ;;  %vm1455_vm5 = vmmov 0  }
  0x60   :  { %525 = vmatprep.subr.bf16.mxu1 %v1200_v14  ;;  %v1573_v58 = vsub.s32 0, %v1570_v57  ;;  %v1579_v60 = vsub.s32 1, %v1570_v57  ;;  %v246_v14 = vld [vmem:[%s1684_s5] sm:$0x7]  ;;  %v258_v15 = vsub.s32 2, %v1570_v57  ;;  %vm743_vm6 = vcmask 64512  }
  0x62   :  { %1107 = vmatpush3.bf16.msra.mxu0 %v1237_v32  ;;  %v102_v61 = vrot.slane %v97_v59, %v1573_v58  ;;  %v106_v62 = vrot.slane %v97_v59, %v1579_v60  ;;  %v251_v16 = vrot.slane %v246_v14, %v1573_v58  ;;  %v259_v19 = vrot.slane %v246_v14, %v258_v15 }
  0x63   :  { %526 = vmatpush1.bf16.msra.mxu1 %v1198_v17  ;;  %1108 = vmatprep.subr.bf16.mxu0 %v1241_v33 }
  0x64   :  { %527 = vmatprep.subr.bf16.mxu1 %v1203_v18 }
  0x66   :  { %1109 = vmatpush3.bf16.msra.mxu0 %v1242_v47  ;;  %v1086_v47 = vld [vmem:[%s1685_s6] ss:$0 sm:$0xff] }
  0x67   :  { %528 = vmatpush1.bf16.msra.mxu1 %v1201_v21  ;;  %1110 = vmatprep.subr.bf16.mxu0 %v1246_v49 }
  0x68   :  { %529 = vmatprep.subr.bf16.mxu1 %v1206_v24 }
  0x6a   :  { %1111 = vmatpush3.bf16.msra.mxu0 %v1247_v51 }
  0x6b   :  { %530 = vmatpush1.bf16.msra.mxu1 %v1204_v25  ;;  %1112 = vmatprep.subr.bf16.mxu0 %v1251_v53 }
  0x6c   :  { %531 = vmatprep.subr.bf16.mxu1 %v1209_v28 }
  0x6e   :  { %1113 = vmatpush3.bf16.msra.mxu0 %v1252_v55 }
  0x6f   :  { %532 = vmatpush1.bf16.msra.mxu1 %v1207_v30  ;;  %1133 = vmatprep.subr.bf16.mxu0 %v1454_v13 }
  0x70   :  { %533 = vmatprep.subr.bf16.mxu1 %v1212_v31 }
  0x73   :  { %534 = vmatpush1.bf16.msra.mxu1 %v1210_v34 }
  0x74   :  { %535 = vmatprep.subr.bf16.mxu1 %v1215_v35 }
  0x77   :  { %536 = vmatpush1.bf16.msra.mxu1 %v1213_v36 }
  0x78   :  { %537 = vmatprep.subr.bf16.mxu1 %v1220_v37 }
  0x7b   :  { %538 = vmatpush1.bf16.msra.mxu1 %v1218_v38  ;;  %v255_v38 = vrot.slane %v246_v14, %v1579_v60 }
  0x7c   :  { %539 = vmatprep.subr.bf16.mxu1 %v1225_v39 }
  0x7f   :  { %540 = vmatpush1.bf16.msra.mxu1 %v1223_v40 }
  0x80   :  { %541 = vmatprep.subr.bf16.mxu1 %v1230_v41 }
  0x83   :  { %542 = vmatpush1.bf16.msra.mxu1 %v1228_v42 }
  0x84   :  { %543 = vmatprep.subr.bf16.mxu1 %v1235_v43 }
  0x87   :  { %544 = vmatpush1.bf16.msra.mxu1 %v1233_v44 }
  0x88   :  { %545 = vmatprep.subr.bf16.mxu1 %v1240_v45 }
  0x8b   :  { %546 = vmatpush1.bf16.msra.mxu1 %v1238_v46 }
  0x8c   :  { %547 = vmatprep.subr.bf16.mxu1 %v1245_v48 }
  0x8f   :  { %548 = vmatpush1.bf16.msra.mxu1 %v1243_v50 }
  0x90   :  { %549 = vmatprep.subr.bf16.mxu1 %v1250_v52 }
  0x93   :  { %550 = vmatpush1.bf16.msra.mxu1 %v1248_v54  ;;  %v635_v54 = vand.u32 127, %v99_v56 }
  0x95   :  { %v1598_v59 = vsub.s32 %v635_v54, %v1570_v57 }
 0x129   :  { %v167_v63 = vpop.f32.mrb[0].mxu1 }
 0x12a   :  { %v168_v0 = vadd.f32 %v167_v63, %v102_v61  ;;  %v169_v1 = vpop.f32.mrb[1].mxu1 }
 0x12b   :  { %v170_v2 = vadd.f32 %v169_v1, %v106_v62  ;;  %v171_v3 = vpop.f32.mrb[2].mxu1 }
 0x12c   :  { %v172_v4 = vadd.f32 %v171_v3, %v102_v61  ;;  %v173_v5 = vpop.f32.mrb[3].mxu1  ;;  %v176_v7 = vmax.f32 %v168_v0, 0.0 }
 0x12d   :  { %v174_v6 = vadd.f32 %v173_v5, %v106_v62  ;;  %v177_v9 = vmax.f32 %v170_v2, 0.0 }
 0x12e   :  { %v178_v8 = vmax.f32 %v172_v4, 0.0 }
 0x12f   :  { %v179_v10 = vmax.f32 %v174_v6, 0.0 }
 0x130   :  { %v180_v11 = vpack.c.bf16 %v178_v8, %v176_v7 }
 0x131   :  { %v181_v12 = vpack.c.bf16 %v179_v10, %v177_v9  ;;  %v703_v9 = vld [vmem:[%s1679_s0] sm:$0x3]  ;;  %s1456_s0 = smov [#allocation11]  }
 0x132   :  { %s1003_s30 = sshll.u32 %s1456_s0, 4  ;;  %s1004_s30 = int_to_ptr.vmem [resolvable:$true] %s1003_s30 }
 0x133   :  { %551 = vmatprep.mubr.bf16.mxu1 %v181_v12  ;;  %594 = vmatprep.mubr.bf16.mxu0 %v181_v12  ;;  %s1367_s1 = scalar_lea.vmem %s1004_s30, 32  ;;  %p1372_p5 = scmp.lt.s32.totalorder %s1004_s30, %s1004_s30 }
 0x134   :  { %552 = vmatmul.mubr.bf16.vlgmr.msra.gmra.mrb[4].mxu1 %v180_v11  ;;  %595 = vmatmul.mubr.bf16.vlgmr.msra.gmra.mrb[0].mxu0 %v180_v11  ;;  %p1368_p4 = scmp.ne.s32.totalorder %s1004_s30, %s1367_s1  ;;  %p1373_p6 = scmp.lt.s32.totalorder %s1367_s1, %s1367_s1 }
 0x135   :  { %1135 = vmatprep.mubr.msk.bf16.mxu0 %vm1455_vm5, %v1454_v13 }
 0x136   :  { %p1374_p7 = por %p1373_p6, %p1372_p5 }
 0x138   :  { %p1375_p8 = pnand %p1374_p7, %p1368_p4 }
 0x207   :  { %v553_v17 = vpop.f32.mrb[4].mxu1  ;;  %v1114_v18 = vpop.f32.mrb[0].mxu0 }
 0x208   :  { %v554_v20 = vadd.f32 %v553_v17, %v251_v16  ;;  %v555_v21 = vpop.f32.mrb[5].mxu1  ;;  %v1115_v22 = vpop.f32.mrb[1].mxu0 }
 0x209   :  { %v1116_v23 = vadd.f32 %v1115_v22, %v1114_v18  ;;  %v557_v24 = vpop.f32.mrb[6].mxu1  ;;  %v1117_v25 = vpop.f32.mrb[2].mxu0  ;;  %v556_v39 = vadd.f32 %v555_v21, %v255_v38 }
 0x20a   :  { %v729_v26 = vpack.c.bf16 %v554_v20, %v554_v20  ;;  %v558_v27 = vadd.f32 %v557_v24, %v251_v16  ;;  %v559_v28 = vpop.f32.mrb[7].mxu1  ;;  %v1118_v29 = vpop.f32.mrb[3].mxu0 }
 0x20b   :  { %v597_v30 = vadd.f32 %v1116_v23, %v259_v19  ;;  %v1119_v31 = vadd.f32 %v1118_v29, %v1117_v25  ;;  %v560_v41 = vadd.f32 %v559_v28, %v255_v38 }
 0x20c   :  { %v749_v32 = vsel %vm747_vm1, %v729_v26, 0  ;;  %v730_v33 = vpack.c.bf16 %v558_v27, %v558_v27 }
 0x20d   :  { %v1084_v34 = vmul.f32 -1.442695, %v597_v30  ;;  %v600_v35 = vadd.f32 %v1119_v31, %v259_v19  ;;  %1134 = vmatpush3.bf16.msra.mxu0 %v749_v32 }
 0x20e   :  { %v1589_v36 = vsel %vm747_vm1, %v730_v33, 0  ;;  %1139 = vmatprep.subr.bf16.mxu0 %v1454_v13 }
 0x20f   :  { %1261 = vpow2.f32 %v1084_v34  ;;  %v1085_v37 = vmul.f32 -1.442695, %v600_v35 }
 0x211   :  { %1263 = vpow2.f32 %v1085_v37 }
 0x212   :  { %1265 = vtanh.f32 %v556_v39 }
 0x219   :  { %v1262_v40 = vpop.eup %1261 }
 0x21a   :  { %v611_v42 = vadd.f32 1.0, %v1262_v40 }
 0x21b   :  { %v1264_v43 = vpop.eup %1263 }
 0x21c   :  { %1267 = vrcp.f32 %v611_v42  ;;  %v612_v44 = vadd.f32 1.0, %v1264_v43  ;;  %v1266_v45 = vpop.eup %1265  ;;  %v1253_v43 = vld [vmem:[#allocation8] sm:$0xff]  }
 0x21d   :  { %1269 = vtanh.f32 %v560_v41 }
 0x21e   :  { %1271 = vrcp.f32 %v612_v44 }
 0x226   :  { %v1268_v46 = vpop.eup %1267 }
 0x227   :  { %v1270_v48 = vpop.eup %1269  ;;  %v617_v49 = vmul.f32 %v1268_v46, %v1266_v45  ;;  %v1255_v46 = vld [vmem:[#allocation8 + $0x10] sm:$0xff]  }
 0x228   :  { %v1272_v50 = vpop.eup %1271 }
 0x229   :  { %v626_v51 = vmul.f32 %v1086_v47, %v617_v49  ;;  %v618_v52 = vmul.f32 %v1272_v50, %v1270_v48  ;;  %v1257_v48 = vld [vmem:[#allocation8 + $0x20] sm:$0xff]   ;;  %v1258_v49 = vld [vmem:[#allocation8 + $0x28] sm:$0xff]   ;;  %v1259_v50 = vld [vmem:[#allocation8 + $0x30] sm:$0xff]  }
 0x22b   :  { %628 = vadd.xlane.f32.xlu0 %v626_v51  ;;  %v627_v53 = vmul.f32 %v1086_v47, %v618_v52  ;;  %v1256_v47 = vld [vmem:[#allocation8 + $0x18] sm:$0xff]  }
 0x22c   :  { %v1260_v51 = vld [vmem:[#allocation8 + $0x38] sm:$0xff]  }
 0x22f   :  { %630 = vadd.xlane.f32.xlu0 %v627_v53 }
 0x2b8   :  { %v629_v55 = vpop.xlane.xlu0 %628 }
 0x2b9   :  { %v639_v62 = vrot.slane %v629_v55, %v1598_v59 }
 0x2bc   :  { %v631_v61 = vpop.xlane.xlu0 %630 }
 0x2bd   :  { %v643_v63 = vrot.slane %v631_v61, %v1598_v59 }
 0x2bf   :  { %v645_v0 = vsel %vm644_vm2, %v643_v63, %v639_v62 }
 0x2c0   :  { %v648_v1 = vsel %vm647_vm3, %v645_v0, -inf }
 0x2c1   :  { %649 = vmax.xlane.f32.xlu1 %v648_v1 }
 0x34e   :  { %v650_v2 = vpop.xlane.xlu1 %649 }
 0x34f   :  { %v655_v3 = vrot.slane %v650_v2, %v1573_v58  ;;  %v659_v56 = vrot.slane %v650_v2, %v1579_v60 }
 0x351   :  { %v662_v4 = vsub.f32 %v629_v55, %v655_v3  ;;  %v663_v57 = vsub.f32 %v631_v61, %v659_v56 }
 0x353   :  { %v664_v5 = vmul.f32 1.442695, %v662_v4  ;;  %v666_v6 = vmul.f32 1.442695, %v663_v57 }
 0x355   :  { %1273 = vpow2.f32 %v664_v5 }
 0x356   :  { %1275 = vpow2.f32 %v666_v6 }
 0x35f   :  { %v1274_v7 = vpop.eup %1273 }
 0x360   :  { %v1276_v8 = vpop.eup %1275  ;;  %671 = vperm.xlu1 %1181, %v1274_v7  }
 0x361   :  { %674 = vperm.xlu0 %1182, %v1276_v8  }
 0x364   :  { %705 = vperm.xlu1 %1181, %v703_v9  }
 0x3df   :  { %v672_v10 = vpop.permute.xlu1 %671 }
 0x3e0   :  { %v675_v11 = vpop.permute.xlu0 %674  ;;  %v679_v12 = vrot.slane %v672_v10, %v1598_v59 }
 0x3e1   :  { %v683_v14 = vrot.slane %v675_v11, %v1598_v59 }
 0x3e3   :  { %v706_v15 = vpop.permute.xlu1 %705  ;;  %v684_v16 = vsel %vm644_vm2, %v683_v14, %v679_v12 }
 0x3e4   :  { %vm707_vm4 = vcmp.lt.s32.totalorder %v635_v54, %v706_v15  ;;  %v686_v17 = vsel %vm647_vm3, %v684_v16, 0.0 }
 0x3e5   :  { %v1087_v18 = vsel %vm707_vm4, 1.0, %v1454_v13  ;;  %687 = vadd.xlane.f32.xlu1 %v686_v17 }
 0x3e6   :  { %v714_v19 = vrot.slane %v1087_v18, %v1573_v58  ;;  %v721_v20 = vrot.slane %v1087_v18, %v1579_v60 }
 0x3e8   :  { %716 = vbcast.lane.b32.xlu0 %v714_v19, 256 }
 0x3ec   :  { %723 = vbcast.lane.b32.xlu0 %v721_v20, 256 }
 0x45a   :  { %v717_v22 = vpop.permute.xlu0 %716 }
 0x45e   :  { %v724_v28 = vpop.permute.xlu0 %723 }
 0x472   :  { %v688_v21 = vpop.xlane.xlu1 %687 }
 0x473   :  { %1277 = vrcp.f32 %v688_v21 }
 0x47d   :  { %v1278_v23 = vpop.eup %1277 }
 0x47e   :  { %v698_v24 = vrot.slane %v1278_v23, %v1579_v60  ;;  %v694_v25 = vrot.slane %v1278_v23, %v1573_v58 }
 0x480   :  { %v702_v26 = vmul.f32 %v1276_v8, %v698_v24  ;;  %v701_v27 = vmul.f32 %v1274_v7, %v694_v25 }
 0x482   :  { %v728_v29 = vmul.f32 %v724_v28, %v702_v26  ;;  %v727_v30 = vmul.f32 %v717_v22, %v701_v27 }
 0x484   :  { %v732_v31 = vpack.c.bf16 %v728_v29, %v728_v29  ;;  %v731_v32 = vpack.c.bf16 %v727_v30, %v727_v30 }
 0x486   :  { %v792_v33 = vunpack.c.l.b16 %v732_v31  ;;  %v734_v34 = vunpack.c.l.b16 %v731_v32 }
 0x488   :  { %794 = vperm.xlu1 %1181, %v792_v33   ;;  %736 = vperm.xlu0 %1182, %v734_v34  }
 0x48c   :  { %965 = vperm.xlu0 %1182, %v727_v30  }
 0x490   :  { %968 = vperm.xlu0 %1182, %v728_v29  }
 0x507   :  { %v737_v60 = vpop.permute.xlu0 %736  ;;  %v795_v37 = vpop.permute.xlu1 %794 }
 0x508   :  { %v741_v58 = vrot.slane %v737_v60, %v1598_v59  ;;  %v799_v39 = vrot.slane %v795_v37, %v1598_v59 }
 0x50a   :  { %v742_v35 = vpack.c.b16 %v741_v58, %v741_v58  ;;  %v800_v44 = vpack.c.b16 %v799_v39, %v799_v39 }
 0x50b   :  { %v966_v38 = vpop.permute.xlu0 %965 }
 0x50c   :  { %1136 = vmatmul.mubr.msk.bf16.vlgmr.msra.gmra.mrb[4].mxu0 %vm743_vm6, %v742_v35  ;;  %v973_v41 = vrot.slane %v966_v38, %v1598_v59 }
 0x50d   :  { %1140 = vmatpush3.bf16.msra.mxu0 %v1589_v36  ;;  %1141 = vmatprep.mubr.msk.bf16.mxu0 %vm1455_vm5, %v1454_v13  ;;  %v1254_v36 = vld [vmem:[#allocation8 + $0x8] sm:$0xff]  }
 0x50e   :  { %1145 = vmatprep.subr.bf16.mxu0 %v1454_v13 }
 0x50f   :  { %v969_v40 = vpop.permute.xlu0 %968 }
 0x510   :  { %v977_v42 = vrot.slane %v969_v40, %v1598_v59 }
 0x512   :  { %v978_v45 = vsel %vm644_vm2, %v977_v42, %v973_v41 }
 0x513   :  { %980 = vst.msk [vmem:[#allocation11] sm:$0x3] %vm647_vm3, %v978_v45 }
 0x514   :  { %1142 = vmatmul.mubr.msk.bf16.vlgmr.msra.gmra.mrb[8].mxu0 %vm743_vm6, %v800_v44 }
 0x515   :  { %1146 = vmatpush3.bf16.msra.mxu0 %v1253_v43  ;;  %1161 = vmatprep.mubr.msk.bf16.mxu0 %vm1455_vm5, %v1454_v13 }
 0x516   :  { %1147 = vmatprep.subr.bf16.mxu0 %v1454_v13 }
 0x519   :  { %1148 = vmatpush3.bf16.msra.mxu0 %v1254_v36 }
 0x51a   :  { %1149 = vmatprep.subr.bf16.mxu0 %v1454_v13 }
 0x51d   :  { %1150 = vmatpush3.bf16.msra.mxu0 %v1255_v46 }
 0x51e   :  { %1151 = vmatprep.subr.bf16.mxu0 %v1454_v13 }
 0x521   :  { %1152 = vmatpush3.bf16.msra.mxu0 %v1256_v47 }
 0x522   :  { %1153 = vmatprep.subr.bf16.mxu0 %v1454_v13 }
 0x525   :  { %1154 = vmatpush3.bf16.msra.mxu0 %v1257_v48 }
 0x526   :  { %1155 = vmatprep.subr.bf16.mxu0 %v1454_v13 }
 0x529   :  { %1156 = vmatpush3.bf16.msra.mxu0 %v1258_v49 }
 0x52a   :  { %1157 = vmatprep.subr.bf16.mxu0 %v1454_v13 }
 0x52d   :  { %1158 = vmatpush3.bf16.msra.mxu0 %v1259_v50 }
 0x52e   :  { %1159 = vmatprep.subr.bf16.mxu0 %v1454_v13 }
 0x531   :  { %1160 = vmatpush3.bf16.msra.mxu0 %v1260_v51 }
 0x5df   :  { %v785_v52 = vpop.f32.mrb[4].mxu0 }
 0x5e0   :  { %v1137_v53 = vpop.f32.mrb[5].mxu0  ;;  %v847_v61 = vpack.c.bf16 %v785_v52, %v785_v52 }
 0x5e1   :  { %v788_v54 = vpop.f32.mrb[6].mxu0 }
 0x5e2   :  { %v1138_v55 = vpop.f32.mrb[7].mxu0  ;;  %v867_v4 = vunpack.c.l.b16 %v847_v61 }
 0x5e7   :  { %v841_v59 = vpop.f32.mrb[8].mxu0 }
 0x5e8   :  { %v848_v62 = vpack.c.bf16 %v841_v59, %v841_v59  ;;  %v983_v63 = vrot.slane %v841_v59, 7  ;;  %v1143_v0 = vpop.f32.mrb[9].mxu0 }
 0x5e9   :  { %v844_v1 = vpop.f32.mrb[10].mxu0 }
 0x5ea   :  { %v868_v2 = vunpack.c.l.b16 %v848_v62  ;;  %v1144_v3 = vpop.f32.mrb[11].mxu0  ;;  %v984_v56 = vsel %vm644_vm2, %v983_v63, %v785_v52 }
 0x5eb   :  { %986 = vst [vmem:[#allocation13] sm:$0x3] %v984_v56 }
 0x5ec   :  { %v869_v57 = vrot.slane %v868_v2, 7 }
 0x5ee   :  { %v870_v13 = vsel %vm644_vm2, %v869_v57, %v867_v4 }
 0x5ef   :  { %v871_v5 = vpack.c.b16 %v870_v13, %v870_v13 }
 0x5f1   :  { %1162 = vmatmul.mubr.bf16.vlgmr.msra.gmra.mrb[12].mxu0 %v871_v5 }
 0x5f2   :  { %1378 = shalt.err (!%p1375_p8)
}
 0x5f3   :  { %s1379_s26 = scalar_lea.hbm %s1688_s9, 32 }
 0x5f4   :  { %p1380_p9 = scmp.ne.s32.totalorder %s1688_s9, %s1379_s26  ;;  %p1383_p10 = scmp.lt.u32.totalorder %s1379_s26, %s1688_s9 }
 0x5f6   :  { %p1385_p11 = pnand %p1383_p10, %p1380_p9 }
 0x5f8   :  { %1388 = shalt.err (!%p1385_p11)
}
 0x5f9   :  { %1006 = dma.vmem_to_hbm [thread:$0]  %s1004_s30, 32, %s1688_s9, [#allocation12]  }
 0x5fa   :  { %s1457_s2 = smov [#allocation13]  }
 0x5fb   :  { %s1013_s14 = sshll.u32 %s1457_s2, 4  ;;  %s1014_s14 = int_to_ptr.vmem [resolvable:$true] %s1013_s14 }
 0x5fc   :  { %s1389_s19 = scalar_lea.vmem %s1014_s14, 32  ;;  %p1394_p13 = scmp.lt.s32.totalorder %s1014_s14, %s1014_s14 }
 0x5fd   :  { %p1390_p12 = scmp.ne.s32.totalorder %s1014_s14, %s1389_s19  ;;  %p1395_p0 = scmp.lt.s32.totalorder %s1389_s19, %s1389_s19 }
 0x5ff   :  { %p1396_p1 = por %p1395_p0, %p1394_p13 }
 0x601   :  { %p1397_p2 = pnand %p1396_p1, %p1390_p12 }
 0x603   :  { %1400 = shalt.err (!%p1397_p2)
}
 0x604   :  { %s1401_s20 = scalar_lea.hbm %s1689_s10, 32 }
 0x605   :  { %p1402_p3 = scmp.ne.s32.totalorder %s1689_s10, %s1401_s20  ;;  %p1405_p4 = scmp.lt.u32.totalorder %s1401_s20, %s1689_s10 }
 0x607   :  { %p1407_p5 = pnand %p1405_p4, %p1402_p3 }
 0x609   :  { %1410 = shalt.err (!%p1407_p5)
}
 0x60a   :  { %1016 = dma.vmem_to_hbm [thread:$0]  %s1014_s14, 32, %s1689_s10, [#allocation12]  }
 0x60b   :  { %s1458_s27 = smov [#allocation10]  }
 0x60c   :  { %s993_s5 = sshll.u32 %s1458_s27, 4  ;;  %s994_s5 = int_to_ptr.vmem [resolvable:$true] %s993_s5 }
 0x60d   :  { %s1411_s28 = scalar_lea.vmem %s994_s5, 32  ;;  %p1416_p7 = scmp.lt.s32.totalorder %s994_s5, %s994_s5 }
 0x60e   :  { %p1412_p6 = scmp.ne.s32.totalorder %s994_s5, %s1411_s28  ;;  %p1417_p8 = scmp.lt.s32.totalorder %s1411_s28, %s1411_s28 }
 0x610   :  { %p1418_p9 = por %p1417_p8, %p1416_p7 }
 0x612   :  { %p1419_p10 = pnand %p1418_p9, %p1412_p6 }
 0x6c4   :  { %v955_v6 = vpop.f32.mrb[12].mxu0 }
 0x6c5   :  { %961 = vst [vmem:[#allocation10] sm:$0x3] %v955_v6  ;;  %v1163_v7 = vpop.f32.mrb[13].mxu0 }
 0x6c6   :  { %v958_v8 = vpop.f32.mrb[14].mxu0 }
 0x6c7   :  { %1422 = shalt.err (!%p1419_p10)
}
 0x6c8   :  { %s1423_s0 = scalar_lea.hbm %s1687_s8, 32 }
 0x6c9   :  { %p1424_p11 = scmp.ne.s32.totalorder %s1687_s8, %s1423_s0  ;;  %p1427_p12 = scmp.lt.u32.totalorder %s1423_s0, %s1687_s8 }
 0x6cb   :  { %p1429_p13 = pnand %p1427_p12, %p1424_p11 }
 0x6cd   :  { %1432 = shalt.err (!%p1429_p13)
}
 0x6ce   :  { %996 = dma.vmem_to_hbm [thread:$0]  %s994_s5, 32, %s1687_s8, [#allocation4]   ;;  %v1164_v9 = vpop.f32.mrb[15].mxu0 }
 0x6cf   :  { %1439 = dma.done.wait [#allocation4], 32  }
 0x6d0   :  { %1440 = vsyncadd [#allocation4], 4294967264 }
 0x6d1   :  { %1441 = dma.done.wait [#allocation12], 64  }
 0x6d2   :  { %1442 = vsyncadd [#allocation12], 4294967232 }
 0x6d3   :  { %1026 = vsyncpa [#allocation3], 1 }
 0x6d4   :  { %1027 = vsyncpa [#allocation6], 1 }
 0x6d5   :  { %1028 = vsyncpa [#allocation9], 1 }
 0x6d6   :  { %1029 = vsyncpa [#allocation4], 1 }
 0x6d7   :  { %1030 = vsyncpa [#allocation12], 1 }

// kernel: tpu_custom_call.1
= control target key start
LH: loop header
LB: loop body
LE: loop exit
PB: predicated region body
PF: predicated region fallthrough
CT: control target
= control target key end

     0   :  { %16 = vsyncpa [#allocation3], 0  ;;  %s1679_s0 = inlined_call_operand.vmem [shape: s32[2,1], index: 0, kind: input, shape index: {}]   ;;  %s1680_s1 = inlined_call_operand.hbm [shape: f32[2,8,32], index: 1, kind: input, shape index: {}]   ;;  %s1681_s2 = inlined_call_operand.hbm [shape: bf16[32,256], index: 2, kind: input, shape index: {}]   ;;  %s1682_s3 = inlined_call_operand.vmem [shape: f32[1,256], index: 3, kind: input, shape index: {}]   ;;  %s1683_s4 = inlined_call_operand.hbm [shape: bf16[256,384], index: 4, kind: input, shape index: {}]   ;;  %s1684_s5 = inlined_call_operand.vmem [shape: f32[1,384], index: 5, kind: input, shape index: {}]   ;;  %s1685_s6 = inlined_call_operand.vmem [shape: f32[1,1,128], index: 6, kind: input, shape index: {}]   ;;  %s1686_s7 = inlined_call_operand.hbm [shape: bf16[128,128], index: 7, kind: input, shape index: {}]   ;;  %s1687_s8 = inlined_call_operand.hbm [shape: f32[2,128], index: 8, kind: output, shape index: {0}]   ;;  %s1688_s9 = inlined_call_operand.hbm [shape: f32[2,8], index: 9, kind: output, shape index: {1}]   ;;  %s1689_s10 = inlined_call_operand.hbm [shape: f32[2,128], index: 10, kind: output, shape index: {2}]  }
   0x1   :  { %17 = vsyncpa [#allocation6], 0 }
   0x2   :  { %18 = vsyncpa [#allocation9], 0 }
   0x3   :  { %19 = vsyncpa [#allocation4], 0 }
   0x4   :  { %20 = vsyncpa [#allocation12], 0  ;;  %s1443_s13 = smov [#allocation5]   ;;  %s1444_s15 = smov [#allocation2]  }
   0x5   :  { %s40_s14 = sshll.u32 %s1443_s13, 4  ;;  %s28_s16 = sshll.u32 %s1444_s15, 4  ;;  %s41_s14 = int_to_ptr.vmem [resolvable:$true] %s40_s14  ;;  %s1514_s16 = int_to_ptr.vmem [resolvable:$true] %s28_s16 }
   0x6   :  { %s1279_s19 = scalar_lea.hbm %s1681_s2, 512 }
   0x7   :  { %p1280_p0 = scmp.ne.s32.totalorder %s1681_s2, %s1279_s19  ;;  %p1283_p1 = scmp.lt.u32.totalorder %s1279_s19, %s1681_s2 }
   0x9   :  { %p1285_p2 = pnand %p1283_p1, %p1280_p0 }
   0xb   :  { %1288 = shalt.err (!%p1285_p2)
}
   0xc   :  { %s1289_s24 = scalar_lea.vmem %s41_s14, 512  ;;  %p1294_p4 = scmp.lt.s32.totalorder %s41_s14, %s41_s14 }
   0xd   :  { %p1290_p3 = scmp.ne.s32.totalorder %s41_s14, %s1289_s24  ;;  %p1295_p5 = scmp.lt.s32.totalorder %s1289_s24, %s1289_s24 }
   0xf   :  { %p1296_p6 = por %p1295_p5, %p1294_p4 }
  0x11   :  { %p1297_p7 = pnand %p1296_p6, %p1290_p3 }
  0x13   :  { %1300 = shalt.err (!%p1297_p7)
}
  0x14   :  { %s1445_s25 = smov 128   ;;  %s1446_s26 = smov 8  }
  0x15   :  { %46 = dma.hbm_to_vmem [thread:$0]  %s1681_s2, 512, %s41_s14, [#allocation6], %s1445_s25, %s1445_s25, %s1446_s26  }
  0x16   :  { %s1301_s11 = scalar_lea.hbm %s1680_s1, 256 }
  0x17   :  { %p1302_p8 = scmp.ne.s32.totalorder %s1680_s1, %s1301_s11  ;;  %p1305_p9 = scmp.lt.u32.totalorder %s1301_s11, %s1680_s1 }
  0x19   :  { %p1307_p10 = pnand %p1305_p9, %p1302_p8 }
  0x1b   :  { %1310 = shalt.err (!%p1307_p10)
}
  0x1c   :  { %s1311_s18 = scalar_lea.vmem %s1514_s16, 256  ;;  %p1316_p12 = scmp.lt.s32.totalorder %s1514_s16, %s1514_s16 }
  0x1d   :  { %p1312_p11 = scmp.ne.s32.totalorder %s1514_s16, %s1311_s18  ;;  %p1317_p13 = scmp.lt.s32.totalorder %s1311_s18, %s1311_s18 }
  0x1f   :  { %p1318_p0 = por %p1317_p13, %p1316_p12 }
  0x21   :  { %p1319_p1 = pnand %p1318_p0, %p1312_p11 }
  0x23   :  { %1322 = shalt.err (!%p1319_p1)
}
  0x24   :  { %34 = dma.hbm_to_vmem [thread:$0]  %s1680_s1, 256, %s1514_s16, [#allocation3], %s1445_s25, %s1445_s25, %s1446_s26  }
  0x25   :  { %s1447_s19 = smov [#allocation7]   ;;  %s1323_s23 = scalar_lea.hbm %s1683_s4, 6144 }
  0x26   :  { %s54_s20 = sshll.u32 %s1447_s19, 4  ;;  %p1324_p2 = scmp.ne.s32.totalorder %s1683_s4, %s1323_s23  ;;  %s55_s20 = int_to_ptr.vmem [resolvable:$true] %s54_s20 }
  0x27   :  { %p1327_p3 = scmp.lt.u32.totalorder %s1323_s23, %s1683_s4 }
  0x29   :  { %p1329_p4 = pnand %p1327_p3, %p1324_p2 }
  0x2b   :  { %1332 = shalt.err (!%p1329_p4)
}
  0x2c   :  { %s1333_s30 = scalar_lea.vmem %s55_s20, 6144  ;;  %p1338_p6 = scmp.lt.s32.totalorder %s55_s20, %s55_s20 }
  0x2d   :  { %p1334_p5 = scmp.ne.s32.totalorder %s55_s20, %s1333_s30  ;;  %p1339_p7 = scmp.lt.s32.totalorder %s1333_s30, %s1333_s30 }
  0x2f   :  { %p1340_p8 = por %p1339_p7, %p1338_p6 }
  0x31   :  { %p1341_p9 = pnand %p1340_p8, %p1334_p5 }
  0x33   :  { %1344 = shalt.err (!%p1341_p9)
}
  0x34   :  { %s1448_s1 = smov 192   ;;  %s1449_s16 = smov 12  }
  0x35   :  { %60 = dma.hbm_to_vmem [thread:$0]  %s1683_s4, 6144, %s55_s20, [#allocation6], %s1448_s1, %s1448_s1, %s1449_s16  }
  0x36   :  { %s1450_s11 = smov [#allocation8]   ;;  %s1345_s17 = scalar_lea.hbm %s1686_s7, 1024 }
  0x37   :  { %s70_s12 = sshll.u32 %s1450_s11, 4  ;;  %p1346_p10 = scmp.ne.s32.totalorder %s1686_s7, %s1345_s17  ;;  %s71_s12 = int_to_ptr.vmem [resolvable:$true] %s70_s12 }
  0x38   :  { %p1349_p11 = scmp.lt.u32.totalorder %s1345_s17, %s1686_s7 }
  0x3a   :  { %p1351_p12 = pnand %p1349_p11, %p1346_p10 }
  0x3c   :  { %1354 = shalt.err (!%p1351_p12)
}
  0x3d   :  { %s1355_s21 = scalar_lea.vmem %s71_s12, 1024  ;;  %p1360_p0 = scmp.lt.s32.totalorder %s71_s12, %s71_s12 }
  0x3e   :  { %p1356_p13 = scmp.ne.s32.totalorder %s71_s12, %s1355_s21  ;;  %p1361_p1 = scmp.lt.s32.totalorder %s1355_s21, %s1355_s21 }
  0x40   :  { %p1362_p2 = por %p1361_p1, %p1360_p0 }
  0x42   :  { %p1363_p3 = pnand %p1362_p2, %p1356_p13 }
  0x44   :  { %1366 = shalt.err (!%p1363_p3)
}
  0x45   :  { %s1451_s4 = smov 64   ;;  %s1452_s20 = smov 4  }
  0x46   :  { %76 = dma.hbm_to_vmem [thread:$0]  %s1686_s7, 1024, %s71_s12, [#allocation9], %s1451_s4, %s1451_s4, %s1452_s20  }
  0x47   :  { %1433 = dma.done.wait [#allocation3], 256  }
  0x48   :  { %1434 = vsyncadd [#allocation3], 4294967040 }
  0x49   :  { %1435 = dma.done.wait [#allocation6], 6656  }
  0x4a   :  { %1436 = vsyncadd [#allocation6], 4294960640 }
  0x4b   :  { %1437 = dma.done.wait [#allocation9], 1024  }
  0x4c   :  { %1438 = vsyncadd [#allocation9], 4294966272  ;;  %v1453_v0 = vmov 0   ;;  %v1183_v1 = vld [vmem:[#allocation5 + $0x4] ss:$8 sps:$4 sm:$0xff]   ;;  %v90_v5 = vld [vmem:[#allocation2] sm:$0xff]  ;;  %v99_v56 = vlaneseq }
  0x4d   :  { %165 = vmatprep.mubr.bf16.mxu1 %v1453_v0  ;;  %1182 = vset.pattern.permute.xlu0 %v1453_v0  ;;  %v1185_v2 = vld [vmem:[#allocation5] ss:$8 sps:$4 sm:$0xff]   ;;  %v1186_v3 = vld [vmem:[#allocation5 + $0x14] ss:$8 sps:$4 sm:$0xff]   ;;  %v1188_v4 = vld [vmem:[#allocation5 + $0x10] ss:$8 sps:$4 sm:$0xff]  }
  0x4e   :  { %1181 = vset.pattern.permute.xlu1 %v1453_v0  ;;  %133 = vmatprep.subr.bf16.mxu1 %v1183_v1  ;;  %v91_v6 = vld [vmem:[#allocation2 + $0x8] sm:$0xff]  ;;  %v1191_v7 = vld [vmem:[#allocation7 + $0x4] ss:$12 sps:$4 sm:$0xff]   ;;  %vm129_vm0 = vcmask 261120   ;;  %v1189_v9 = vld [vmem:[#allocation7] ss:$12 sps:$4 sm:$0xff]  }
  0x4f   :  { %134 = vmatpush1.bf16.msra.mxu1 %v1185_v2  ;;  %v92_v8 = vpack.c.bf16 %v91_v6, %v90_v5  ;;  %v1194_v10 = vld [vmem:[#allocation7 + $0x1c] ss:$12 sps:$4 sm:$0xff]   ;;  %v1192_v11 = vld [vmem:[#allocation7 + $0x18] ss:$12 sps:$4 sm:$0xff]   ;;  %v1197_v12 = vld [vmem:[#allocation7 + $0x34] ss:$12 sps:$4 sm:$0xff]  }
  0x50   :  { %135 = vmatprep.subr.bf16.mxu1 %v1186_v3  ;;  %v1195_v13 = vld [vmem:[#allocation7 + $0x30] ss:$12 sps:$4 sm:$0xff]   ;;  %v1200_v14 = vld [vmem:[#allocation7 + $0x4c] ss:$12 sps:$4 sm:$0xff]   ;;  %v1216_v15 = vld [vmem:[#allocation7 + $0xc8] ss:$12 sps:$4 sm:$0xff]  }
  0x51   :  { %v1217_v16 = vld [vmem:[#allocation7 + $0x8] ss:$12 sps:$4 sm:$0xff]   ;;  %v1203_v18 = vld [vmem:[#allocation7 + $0x64] ss:$12 sps:$4 sm:$0xff]   ;;  %1098 = vmatprep.subr.bf16.mxu0 %v1216_v15  ;;  %v1221_v19 = vld [vmem:[#allocation7 + $0xe0] ss:$12 sps:$4 sm:$0xff]  }
  0x52   :  { %v1198_v17 = vld [vmem:[#allocation7 + $0x48] ss:$12 sps:$4 sm:$0xff]   ;;  %1099 = vmatpush3.bf16.msra.mxu0 %v1217_v16  ;;  %v1222_v20 = vld [vmem:[#allocation7 + $0x20] ss:$12 sps:$4 sm:$0xff]   ;;  %v1226_v22 = vld [vmem:[#allocation7 + $0xf8] ss:$12 sps:$4 sm:$0xff]  }
  0x53   :  { %136 = vmatpush1.bf16.msra.mxu1 %v1188_v4  ;;  %v1201_v21 = vld [vmem:[#allocation7 + $0x60] ss:$12 sps:$4 sm:$0xff]   ;;  %1100 = vmatprep.subr.bf16.mxu0 %v1221_v19  ;;  %v1227_v23 = vld [vmem:[#allocation7 + $0x38] ss:$12 sps:$4 sm:$0xff]   ;;  %v1206_v24 = vld [vmem:[#allocation7 + $0x7c] ss:$12 sps:$4 sm:$0xff]  }
  0x54   :  { %519 = vmatprep.subr.bf16.mxu1 %v1191_v7  ;;  %v1204_v25 = vld [vmem:[#allocation7 + $0x78] ss:$12 sps:$4 sm:$0xff]   ;;  %v1231_v26 = vld [vmem:[#allocation7 + $0x110] ss:$12 sps:$4 sm:$0xff]   ;;  %v1209_v28 = vld [vmem:[#allocation7 + $0x94] ss:$12 sps:$4 sm:$0xff]  }
  0x55   :  { %v1232_v27 = vld [vmem:[#allocation7 + $0x50] ss:$12 sps:$4 sm:$0xff]   ;;  %v1236_v29 = vld [vmem:[#allocation7 + $0x128] ss:$12 sps:$4 sm:$0xff]   ;;  %v1212_v31 = vld [vmem:[#allocation7 + $0xac] ss:$12 sps:$4 sm:$0xff]  }
  0x56   :  { %1035 = vmatmul.mubr.msk.bf16.vlgmr.msra.gmra.mrb[0].mxu1 %vm129_vm0, %v92_v8  ;;  %1101 = vmatpush3.bf16.msra.mxu0 %v1222_v20  ;;  %v1207_v30 = vld [vmem:[#allocation7 + $0x90] ss:$12 sps:$4 sm:$0xff]   ;;  %v1237_v32 = vld [vmem:[#allocation7 + $0x68] ss:$12 sps:$4 sm:$0xff]   ;;  %v1241_v33 = vld [vmem:[#allocation7 + $0x140] ss:$12 sps:$4 sm:$0xff]  }
  0x57   :  { %520 = vmatpush1.bf16.msra.mxu1 %v1189_v9  ;;  %1102 = vmatprep.subr.bf16.mxu0 %v1226_v22  ;;  %v1210_v34 = vld [vmem:[#allocation7 + $0xa8] ss:$12 sps:$4 sm:$0xff]   ;;  %v1215_v35 = vld [vmem:[#allocation7 + $0xc4] ss:$12 sps:$4 sm:$0xff]   ;;  %v1213_v36 = vld [vmem:[#allocation7 + $0xc0] ss:$12 sps:$4 sm:$0xff]  }
  0x58   :  { %521 = vmatprep.subr.bf16.mxu1 %v1194_v10  ;;  %v1220_v37 = vld [vmem:[#allocation7 + $0xdc] ss:$12 sps:$4 sm:$0xff]   ;;  %v1218_v38 = vld [vmem:[#allocation7 + $0xd8] ss:$12 sps:$4 sm:$0xff]   ;;  %v1225_v39 = vld [vmem:[#allocation7 + $0xf4] ss:$12 sps:$4 sm:$0xff]  }
  0x59   :  { %v1223_v40 = vld [vmem:[#allocation7 + $0xf0] ss:$12 sps:$4 sm:$0xff]   ;;  %v1230_v41 = vld [vmem:[#allocation7 + $0x10c] ss:$12 sps:$4 sm:$0xff]   ;;  %v1228_v42 = vld [vmem:[#allocation7 + $0x108] ss:$12 sps:$4 sm:$0xff]  }
  0x5a   :  { %1103 = vmatpush3.bf16.msra.mxu0 %v1227_v23  ;;  %v1235_v43 = vld [vmem:[#allocation7 + $0x124] ss:$12 sps:$4 sm:$0xff]   ;;  %v1233_v44 = vld [vmem:[#allocation7 + $0x120] ss:$12 sps:$4 sm:$0xff]   ;;  %v1240_v45 = vld [vmem:[#allocation7 + $0x13c] ss:$12 sps:$4 sm:$0xff]  }
  0x5b   :  { %522 = vmatpush1.bf16.msra.mxu1 %v1192_v11  ;;  %1104 = vmatprep.subr.bf16.mxu0 %v1231_v26  ;;  %v1238_v46 = vld [vmem:[#allocation7 + $0x138] ss:$12 sps:$4 sm:$0xff]   ;;  %v1242_v47 = vld [vmem:[#allocation7 + $0x80] ss:$12 sps:$4 sm:$0xff]   ;;  %v1243_v50 = vld [vmem:[#allocation7 + $0x150] ss:$12 sps:$4 sm:$0xff]  }
  0x5c   :  { %523 = vmatprep.subr.bf16.mxu1 %v1197_v12  ;;  %v1245_v48 = vld [vmem:[#allocation7 + $0x154] ss:$12 sps:$4 sm:$0xff]   ;;  %v1246_v49 = vld [vmem:[#allocation7 + $0x158] ss:$12 sps:$4 sm:$0xff]   ;;  %v1251_v53 = vld [vmem:[#allocation7 + $0x170] ss:$12 sps:$4 sm:$0xff]  }
  0x5d   :  { %v1247_v51 = vld [vmem:[#allocation7 + $0x98] ss:$12 sps:$4 sm:$0xff]   ;;  %v1248_v54 = vld [vmem:[#allocation7 + $0x168] ss:$12 sps:$4 sm:$0xff]   ;;  %v1252_v55 = vld [vmem:[#allocation7 + $0xb0] ss:$12 sps:$4 sm:$0xff]  }
  0x5e   :  { %1105 = vmatpush3.bf16.msra.mxu0 %v1232_v27  ;;  %v1250_v52 = vld [vmem:[#allocation7 + $0x16c] ss:$12 sps:$4 sm:$0xff]   ;;  %v1570_v57 = vshrl.u32 %v99_v56, 7  ;;  %v97_v59 = vld [vmem:[%s1682_s3] sm:$0x3]  ;;  %vm747_vm1 = vcmask 1043456  }
  0x5f   :  { %524 = vmatpush1.bf16.msra.mxu1 %v1195_v13  ;;  %1106 = vmatprep.subr.bf16.mxu0 %v1236_v29  ;;  %v1454_v13 = vmov 0.0   ;;  %vm644_vm2 = vcmask 1041409   ;;  %vm647_vm3 = vcmask 58368   ;;  %vm1455_vm5 = vmmov 0  }
  0x60   :  { %525 = vmatprep.subr.bf16.mxu1 %v1200_v14  ;;  %v1573_v58 = vsub.s32 0, %v1570_v57  ;;  %v1579_v60 = vsub.s32 1, %v1570_v57  ;;  %v246_v14 = vld [vmem:[%s1684_s5] sm:$0x7]  ;;  %v258_v15 = vsub.s32 2, %v1570_v57  ;;  %vm743_vm6 = vcmask 64512  }
  0x62   :  { %1107 = vmatpush3.bf16.msra.mxu0 %v1237_v32  ;;  %v102_v61 = vrot.slane %v97_v59, %v1573_v58  ;;  %v106_v62 = vrot.slane %v97_v59, %v1579_v60  ;;  %v251_v16 = vrot.slane %v246_v14, %v1573_v58  ;;  %v259_v19 = vrot.slane %v246_v14, %v258_v15 }
  0x63   :  { %526 = vmatpush1.bf16.msra.mxu1 %v1198_v17  ;;  %1108 = vmatprep.subr.bf16.mxu0 %v1241_v33 }
  0x64   :  { %527 = vmatprep.subr.bf16.mxu1 %v1203_v18 }
  0x66   :  { %1109 = vmatpush3.bf16.msra.mxu0 %v1242_v47  ;;  %v1086_v47 = vld [vmem:[%s1685_s6] ss:$0 sm:$0xff] }
  0x67   :  { %528 = vmatpush1.bf16.msra.mxu1 %v1201_v21  ;;  %1110 = vmatprep.subr.bf16.mxu0 %v1246_v49 }
  0x68   :  { %529 = vmatprep.subr.bf16.mxu1 %v1206_v24 }
  0x6a   :  { %1111 = vmatpush3.bf16.msra.mxu0 %v1247_v51 }
  0x6b   :  { %530 = vmatpush1.bf16.msra.mxu1 %v1204_v25  ;;  %1112 = vmatprep.subr.bf16.mxu0 %v1251_v53 }
  0x6c   :  { %531 = vmatprep.subr.bf16.mxu1 %v1209_v28 }
  0x6e   :  { %1113 = vmatpush3.bf16.msra.mxu0 %v1252_v55 }
  0x6f   :  { %532 = vmatpush1.bf16.msra.mxu1 %v1207_v30  ;;  %1133 = vmatprep.subr.bf16.mxu0 %v1454_v13 }
  0x70   :  { %533 = vmatprep.subr.bf16.mxu1 %v1212_v31 }
  0x73   :  { %534 = vmatpush1.bf16.msra.mxu1 %v1210_v34 }
  0x74   :  { %535 = vmatprep.subr.bf16.mxu1 %v1215_v35 }
  0x77   :  { %536 = vmatpush1.bf16.msra.mxu1 %v1213_v36 }
  0x78   :  { %537 = vmatprep.subr.bf16.mxu1 %v1220_v37 }
  0x7b   :  { %538 = vmatpush1.bf16.msra.mxu1 %v1218_v38  ;;  %v255_v38 = vrot.slane %v246_v14, %v1579_v60 }
  0x7c   :  { %539 = vmatprep.subr.bf16.mxu1 %v1225_v39 }
  0x7f   :  { %540 = vmatpush1.bf16.msra.mxu1 %v1223_v40 }
  0x80   :  { %541 = vmatprep.subr.bf16.mxu1 %v1230_v41 }
  0x83   :  { %542 = vmatpush1.bf16.msra.mxu1 %v1228_v42 }
  0x84   :  { %543 = vmatprep.subr.bf16.mxu1 %v1235_v43 }
  0x87   :  { %544 = vmatpush1.bf16.msra.mxu1 %v1233_v44 }
  0x88   :  { %545 = vmatprep.subr.bf16.mxu1 %v1240_v45 }
  0x8b   :  { %546 = vmatpush1.bf16.msra.mxu1 %v1238_v46 }
  0x8c   :  { %547 = vmatprep.subr.bf16.mxu1 %v1245_v48 }
  0x8f   :  { %548 = vmatpush1.bf16.msra.mxu1 %v1243_v50 }
  0x90   :  { %549 = vmatprep.subr.bf16.mxu1 %v1250_v52 }
  0x93   :  { %550 = vmatpush1.bf16.msra.mxu1 %v1248_v54  ;;  %v635_v54 = vand.u32 127, %v99_v56 }
  0x95   :  { %v1598_v59 = vsub.s32 %v635_v54, %v1570_v57 }
 0x129   :  { %v167_v63 = vpop.f32.mrb[0].mxu1 }
 0x12a   :  { %v168_v0 = vadd.f32 %v167_v63, %v102_v61  ;;  %v169_v1 = vpop.f32.mrb[1].mxu1 }
 0x12b   :  { %v170_v2 = vadd.f32 %v169_v1, %v106_v62  ;;  %v171_v3 = vpop.f32.mrb[2].mxu1 }
 0x12c   :  { %v172_v4 = vadd.f32 %v171_v3, %v102_v61  ;;  %v173_v5 = vpop.f32.mrb[3].mxu1  ;;  %v176_v7 = vmax.f32 %v168_v0, 0.0 }
 0x12d   :  { %v174_v6 = vadd.f32 %v173_v5, %v106_v62  ;;  %v177_v9 = vmax.f32 %v170_v2, 0.0 }
 0x12e   :  { %v178_v8 = vmax.f32 %v172_v4, 0.0 }
 0x12f   :  { %v179_v10 = vmax.f32 %v174_v6, 0.0 }
 0x130   :  { %v180_v11 = vpack.c.bf16 %v178_v8, %v176_v7 }
 0x131   :  { %v181_v12 = vpack.c.bf16 %v179_v10, %v177_v9  ;;  %v703_v9 = vld [vmem:[%s1679_s0] sm:$0x3]  ;;  %s1456_s0 = smov [#allocation11]  }
 0x132   :  { %s1003_s30 = sshll.u32 %s1456_s0, 4  ;;  %s1004_s30 = int_to_ptr.vmem [resolvable:$true] %s1003_s30 }
 0x133   :  { %551 = vmatprep.mubr.bf16.mxu1 %v181_v12  ;;  %594 = vmatprep.mubr.bf16.mxu0 %v181_v12  ;;  %s1367_s1 = scalar_lea.vmem %s1004_s30, 32  ;;  %p1372_p5 = scmp.lt.s32.totalorder %s1004_s30, %s1004_s30 }
 0x134   :  { %552 = vmatmul.mubr.bf16.vlgmr.msra.gmra.mrb[4].mxu1 %v180_v11  ;;  %595 = vmatmul.mubr.bf16.vlgmr.msra.gmra.mrb[0].mxu0 %v180_v11  ;;  %p1368_p4 = scmp.ne.s32.totalorder %s1004_s30, %s1367_s1  ;;  %p1373_p6 = scmp.lt.s32.totalorder %s1367_s1, %s1367_s1 }
 0x135   :  { %1135 = vmatprep.mubr.msk.bf16.mxu0 %vm1455_vm5, %v1454_v13 }
 0x136   :  { %p1374_p7 = por %p1373_p6, %p1372_p5 }
 0x138   :  { %p1375_p8 = pnand %p1374_p7, %p1368_p4 }
 0x207   :  { %v553_v17 = vpop.f32.mrb[4].mxu1  ;;  %v1114_v18 = vpop.f32.mrb[0].mxu0 }
 0x208   :  { %v554_v20 = vadd.f32 %v553_v17, %v251_v16  ;;  %v555_v21 = vpop.f32.mrb[5].mxu1  ;;  %v1115_v22 = vpop.f32.mrb[1].mxu0 }
 0x209   :  { %v1116_v23 = vadd.f32 %v1115_v22, %v1114_v18  ;;  %v557_v24 = vpop.f32.mrb[6].mxu1  ;;  %v1117_v25 = vpop.f32.mrb[2].mxu0  ;;  %v556_v39 = vadd.f32 %v555_v21, %v255_v38 }
 0x20a   :  { %v729_v26 = vpack.c.bf16 %v554_v20, %v554_v20  ;;  %v558_v27 = vadd.f32 %v557_v24, %v251_v16  ;;  %v559_v28 = vpop.f32.mrb[7].mxu1  ;;  %v1118_v29 = vpop.f32.mrb[3].mxu0 }
 0x20b   :  { %v597_v30 = vadd.f32 %v1116_v23, %v259_v19  ;;  %v1119_v31 = vadd.f32 %v1118_v29, %v1117_v25  ;;  %v560_v41 = vadd.f32 %v559_v28, %v255_v38 }
 0x20c   :  { %v749_v32 = vsel %vm747_vm1, %v729_v26, 0  ;;  %v730_v33 = vpack.c.bf16 %v558_v27, %v558_v27 }
 0x20d   :  { %v1084_v34 = vmul.f32 -1.442695, %v597_v30  ;;  %v600_v35 = vadd.f32 %v1119_v31, %v259_v19  ;;  %1134 = vmatpush3.bf16.msra.mxu0 %v749_v32 }
 0x20e   :  { %v1589_v36 = vsel %vm747_vm1, %v730_v33, 0  ;;  %1139 = vmatprep.subr.bf16.mxu0 %v1454_v13 }
 0x20f   :  { %1261 = vpow2.f32 %v1084_v34  ;;  %v1085_v37 = vmul.f32 -1.442695, %v600_v35 }
 0x211   :  { %1263 = vpow2.f32 %v1085_v37 }
 0x212   :  { %1265 = vtanh.f32 %v556_v39 }
 0x219   :  { %v1262_v40 = vpop.eup %1261 }
 0x21a   :  { %v611_v42 = vadd.f32 1.0, %v1262_v40 }
 0x21b   :  { %v1264_v43 = vpop.eup %1263 }
 0x21c   :  { %1267 = vrcp.f32 %v611_v42  ;;  %v612_v44 = vadd.f32 1.0, %v1264_v43  ;;  %v1266_v45 = vpop.eup %1265  ;;  %v1253_v43 = vld [vmem:[#allocation8] sm:$0xff]  }
 0x21d   :  { %1269 = vtanh.f32 %v560_v41 }
 0x21e   :  { %1271 = vrcp.f32 %v612_v44 }
 0x226   :  { %v1268_v46 = vpop.eup %1267 }
 0x227   :  { %v1270_v48 = vpop.eup %1269  ;;  %v617_v49 = vmul.f32 %v1268_v46, %v1266_v45  ;;  %v1255_v46 = vld [vmem:[#allocation8 + $0x10] sm:$0xff]  }
 0x228   :  { %v1272_v50 = vpop.eup %1271 }
 0x229   :  { %v626_v51 = vmul.f32 %v1086_v47, %v617_v49  ;;  %v618_v52 = vmul.f32 %v1272_v50, %v1270_v48  ;;  %v1257_v48 = vld [vmem:[#allocation8 + $0x20] sm:$0xff]   ;;  %v1258_v49 = vld [vmem:[#allocation8 + $0x28] sm:$0xff]   ;;  %v1259_v50 = vld [vmem:[#allocation8 + $0x30] sm:$0xff]  }
 0x22b   :  { %628 = vadd.xlane.f32.xlu0 %v626_v51  ;;  %v627_v53 = vmul.f32 %v1086_v47, %v618_v52  ;;  %v1256_v47 = vld [vmem:[#allocation8 + $0x18] sm:$0xff]  }
 0x22c   :  { %v1260_v51 = vld [vmem:[#allocation8 + $0x38] sm:$0xff]  }
 0x22f   :  { %630 = vadd.xlane.f32.xlu0 %v627_v53 }
 0x2b8   :  { %v629_v55 = vpop.xlane.xlu0 %628 }
 0x2b9   :  { %v639_v62 = vrot.slane %v629_v55, %v1598_v59 }
 0x2bc   :  { %v631_v61 = vpop.xlane.xlu0 %630 }
 0x2bd   :  { %v643_v63 = vrot.slane %v631_v61, %v1598_v59 }
 0x2bf   :  { %v645_v0 = vsel %vm644_vm2, %v643_v63, %v639_v62 }
 0x2c0   :  { %v648_v1 = vsel %vm647_vm3, %v645_v0, -inf }
 0x2c1   :  { %649 = vmax.xlane.f32.xlu1 %v648_v1 }
 0x34e   :  { %v650_v2 = vpop.xlane.xlu1 %649 }
 0x34f   :  { %v655_v3 = vrot.slane %v650_v2, %v1573_v58  ;;  %v659_v56 = vrot.slane %v650_v2, %v1579_v60 }
 0x351   :  { %v662_v4 = vsub.f32 %v629_v55, %v655_v3  ;;  %v663_v57 = vsub.f32 %v631_v61, %v659_v56 }
 0x353   :  { %v664_v5 = vmul.f32 1.442695, %v662_v4  ;;  %v666_v6 = vmul.f32 1.442695, %v663_v57 }
 0x355   :  { %1273 = vpow2.f32 %v664_v5 }
 0x356   :  { %1275 = vpow2.f32 %v666_v6 }
 0x35f   :  { %v1274_v7 = vpop.eup %1273 }
 0x360   :  { %v1276_v8 = vpop.eup %1275  ;;  %671 = vperm.xlu1 %1181, %v1274_v7  }
 0x361   :  { %674 = vperm.xlu0 %1182, %v1276_v8  }
 0x364   :  { %705 = vperm.xlu1 %1181, %v703_v9  }
 0x3df   :  { %v672_v10 = vpop.permute.xlu1 %671 }
 0x3e0   :  { %v675_v11 = vpop.permute.xlu0 %674  ;;  %v679_v12 = vrot.slane %v672_v10, %v1598_v59 }
 0x3e1   :  { %v683_v14 = vrot.slane %v675_v11, %v1598_v59 }
 0x3e3   :  { %v706_v15 = vpop.permute.xlu1 %705  ;;  %v684_v16 = vsel %vm644_vm2, %v683_v14, %v679_v12 }
 0x3e4   :  { %vm707_vm4 = vcmp.lt.s32.totalorder %v635_v54, %v706_v15  ;;  %v686_v17 = vsel %vm647_vm3, %v684_v16, 0.0 }
 0x3e5   :  { %v1087_v18 = vsel %vm707_vm4, 1.0, %v1454_v13  ;;  %687 = vadd.xlane.f32.xlu1 %v686_v17 }
 0x3e6   :  { %v714_v19 = vrot.slane %v1087_v18, %v1573_v58  ;;  %v721_v20 = vrot.slane %v1087_v18, %v1579_v60 }
 0x3e8   :  { %716 = vbcast.lane.b32.xlu0 %v714_v19, 256 }
 0x3ec   :  { %723 = vbcast.lane.b32.xlu0 %v721_v20, 256 }
 0x45a   :  { %v717_v22 = vpop.permute.xlu0 %716 }
 0x45e   :  { %v724_v28 = vpop.permute.xlu0 %723 }
 0x472   :  { %v688_v21 = vpop.xlane.xlu1 %687 }
 0x473   :  { %1277 = vrcp.f32 %v688_v21 }
 0x47d   :  { %v1278_v23 = vpop.eup %1277 }
 0x47e   :  { %v698_v24 = vrot.slane %v1278_v23, %v1579_v60  ;;  %v694_v25 = vrot.slane %v1278_v23, %v1573_v58 }
 0x480   :  { %v702_v26 = vmul.f32 %v1276_v8, %v698_v24  ;;  %v701_v27 = vmul.f32 %v1274_v7, %v694_v25 }
 0x482   :  { %v728_v29 = vmul.f32 %v724_v28, %v702_v26  ;;  %v727_v30 = vmul.f32 %v717_v22, %v701_v27 }
 0x484   :  { %v732_v31 = vpack.c.bf16 %v728_v29, %v728_v29  ;;  %v731_v32 = vpack.c.bf16 %v727_v30, %v727_v30 }
 0x486   :  { %v792_v33 = vunpack.c.l.b16 %v732_v31  ;;  %v734_v34 = vunpack.c.l.b16 %v731_v32 }
 0x488   :  { %794 = vperm.xlu1 %1181, %v792_v33   ;;  %736 = vperm.xlu0 %1182, %v734_v34  }
 0x48c   :  { %965 = vperm.xlu0 %1182, %v727_v30  }
 0x490   :  { %968 = vperm.xlu0 %1182, %v728_v29  }
 0x507   :  { %v737_v60 = vpop.permute.xlu0 %736  ;;  %v795_v37 = vpop.permute.xlu1 %794 }
 0x508   :  { %v741_v58 = vrot.slane %v737_v60, %v1598_v59  ;;  %v799_v39 = vrot.slane %v795_v37, %v1598_v59 }
 0x50a   :  { %v742_v35 = vpack.c.b16 %v741_v58, %v741_v58  ;;  %v800_v44 = vpack.c.b16 %v799_v39, %v799_v39 }
 0x50b   :  { %v966_v38 = vpop.permute.xlu0 %965 }
 0x50c   :  { %1136 = vmatmul.mubr.msk.bf16.vlgmr.msra.gmra.mrb[4].mxu0 %vm743_vm6, %v742_v35  ;;  %v973_v41 = vrot.slane %v966_v38, %v1598_v59 }
 0x50d   :  { %1140 = vmatpush3.bf16.msra.mxu0 %v1589_v36  ;;  %1141 = vmatprep.mubr.msk.bf16.mxu0 %vm1455_vm5, %v1454_v13  ;;  %v1254_v36 = vld [vmem:[#allocation8 + $0x8] sm:$0xff]  }
 0x50e   :  { %1145 = vmatprep.subr.bf16.mxu0 %v1454_v13 }
 0x50f   :  { %v969_v40 = vpop.permute.xlu0 %968 }
 0x510   :  { %v977_v42 = vrot.slane %v969_v40, %v1598_v59 }
 0x512   :  { %v978_v45 = vsel %vm644_vm2, %v977_v42, %v973_v41 }
 0x513   :  { %980 = vst.msk [vmem:[#allocation11] sm:$0x3] %vm647_vm3, %v978_v45 }
 0x514   :  { %1142 = vmatmul.mubr.msk.bf16.vlgmr.msra.gmra.mrb[8].mxu0 %vm743_vm6, %v800_v44 }
 0x515   :  { %1146 = vmatpush3.bf16.msra.mxu0 %v1253_v43  ;;  %1161 = vmatprep.mubr.msk.bf16.mxu0 %vm1455_vm5, %v1454_v13 }
 0x516   :  { %1147 = vmatprep.subr.bf16.mxu0 %v1454_v13 }
 0x519   :  { %1148 = vmatpush3.bf16.msra.mxu0 %v1254_v36 }
 0x51a   :  { %1149 = vmatprep.subr.bf16.mxu0 %v1454_v13 }
 0x51d   :  { %1150 = vmatpush3.bf16.msra.mxu0 %v1255_v46 }
 0x51e   :  { %1151 = vmatprep.subr.bf16.mxu0 %v1454_v13 }
 0x521   :  { %1152 = vmatpush3.bf16.msra.mxu0 %v1256_v47 }
 0x522   :  { %1153 = vmatprep.subr.bf16.mxu0 %v1454_v13 }
 0x525   :  { %1154 = vmatpush3.bf16.msra.mxu0 %v1257_v48 }
 0x526   :  { %1155 = vmatprep.subr.bf16.mxu0 %v1454_v13 }
 0x529   :  { %1156 = vmatpush3.bf16.msra.mxu0 %v1258_v49 }
 0x52a   :  { %1157 = vmatprep.subr.bf16.mxu0 %v1454_v13 }
 0x52d   :  { %1158 = vmatpush3.bf16.msra.mxu0 %v1259_v50 }
 0x52e   :  { %1159 = vmatprep.subr.bf16.mxu0 %v1454_v13 }
 0x531   :  { %1160 = vmatpush3.bf16.msra.mxu0 %v1260_v51 }
 0x5df   :  { %v785_v52 = vpop.f32.mrb[4].mxu0 }
 0x5e0   :  { %v1137_v53 = vpop.f32.mrb[5].mxu0  ;;  %v847_v61 = vpack.c.bf16 %v785_v52, %v785_v52 }
 0x5e1   :  { %v788_v54 = vpop.f32.mrb[6].mxu0 }
 0x5e2   :  { %v1138_v55 = vpop.f32.mrb[7].mxu0  ;;  %v867_v4 = vunpack.c.l.b16 %v847_v61 }
 0x5e7   :  { %v841_v59 = vpop.f32.mrb[8].mxu0 }
 0x5e8   :  { %v848_v62 = vpack.c.bf16 %v841_v59, %v841_v59  ;;  %v983_v63 = vrot.slane %v841_v59, 7  ;;  %v1143_v0 = vpop.f32.mrb[9].mxu0 }
 0x5e9   :  { %v844_v1 = vpop.f32.mrb[10].mxu0 }
 0x5ea   :  { %v868_v2 = vunpack.c.l.b16 %v848_v62  ;;  %v1144_v3 = vpop.f32.mrb[11].mxu0  ;;  %v984_v56 = vsel %vm644_vm2, %v983_v63, %v785_v52 }
 0x5eb   :  { %986 = vst [vmem:[#allocation13] sm:$0x3] %v984_v56 }
 0x5ec   :  { %v869_v57 = vrot.slane %v868_v2, 7 }
 0x5ee   :  { %v870_v13 = vsel %vm644_vm2, %v869_v57, %v867_v4 }
 0x5ef   :  { %v871_v5 = vpack.c.b16 %v870_v13, %v870_v13 }
 0x5f1   :  { %1162 = vmatmul.mubr.bf16.vlgmr.msra.gmra.mrb[12].mxu0 %v871_v5 }
 0x5f2   :  { %1378 = shalt.err (!%p1375_p8)
}
 0x5f3   :  { %s1379_s26 = scalar_lea.hbm %s1688_s9, 32 }
 0x5f4   :  { %p1380_p9 = scmp.ne.s32.totalorder %s1688_s9, %s1379_s26  ;;  %p1383_p10 = scmp.lt.u32.totalorder %s1379_s26, %s1688_s9 }
 0x5f6   :  { %p1385_p11 = pnand %p1383_p10, %p1380_p9 }
 0x5f8   :  { %1388 = shalt.err (!%p1385_p11)
}
 0x5f9   :  { %1006 = dma.vmem_to_hbm [thread:$0]  %s1004_s30, 32, %s1688_s9, [#allocation12]  }
 0x5fa   :  { %s1457_s2 = smov [#allocation13]  }
 0x5fb   :  { %s1013_s14 = sshll.u32 %s1457_s2, 4  ;;  %s1014_s14 = int_to_ptr.vmem [resolvable:$true] %s1013_s14 }
 0x5fc   :  { %s1389_s19 = scalar_lea.vmem %s1014_s14, 32  ;;  %p1394_p13 = scmp.lt.s32.totalorder %s1014_s14, %s1014_s14 }
 0x5fd   :  { %p1390_p12 = scmp.ne.s32.totalorder %s1014_s14, %s1389_s19  ;;  %p1395_p0 = scmp.lt.s32.totalorder %s1389_s19, %s1389_s19 }
 0x5ff   :  { %p1396_p1 = por %p1395_p0, %p1394_p13 }
 0x601   :  { %p1397_p2 = pnand %p1396_p1, %p1390_p12 }
 0x603   :  { %1400 = shalt.err (!%p1397_p2)
}
 0x604   :  { %s1401_s20 = scalar_lea.hbm %s1689_s10, 32 }
 0x605   :  { %p1402_p3 = scmp.ne.s32.totalorder %s1689_s10, %s1401_s20  ;;  %p1405_p4 = scmp.lt.u32.totalorder %s1401_s20, %s1689_s10 }
 0x607   :  { %p1407_p5 = pnand %p1405_p4, %p1402_p3 }
 0x609   :  { %1410 = shalt.err (!%p1407_p5)
}
 0x60a   :  { %1016 = dma.vmem_to_hbm [thread:$0]  %s1014_s14, 32, %s1689_s10, [#allocation12]  }
 0x60b   :  { %s1458_s27 = smov [#allocation10]  }
 0x60c   :  { %s993_s5 = sshll.u32 %s1458_s27, 4  ;;  %s994_s5 = int_to_ptr.vmem [resolvable:$true] %s993_s5 }
 0x60d   :  { %s1411_s28 = scalar_lea.vmem %s994_s5, 32  ;;  %p1416_p7 = scmp.lt.s32.totalorder %s994_s5, %s994_s5 }
 0x60e   :  { %p1412_p6 = scmp.ne.s32.totalorder %s994_s5, %s1411_s28  ;;  %p1417_p8 = scmp.lt.s32.totalorder %s1411_s28, %s1411_s28 }
 0x610   :  { %p1418_p9 = por %p1417_p8, %p1416_p7 }
 0x612   :  { %p1419_p10 = pnand %p1418_p9, %p1412_p6 }
 0x6c4   :  { %v955_v6 = vpop.f32.mrb[12].mxu0 }
 0x6c5   :  { %961 = vst [vmem:[#allocation10] sm:$0x3] %v955_v6  ;;  %v1163_v7 = vpop.f32.mrb[13].mxu0 }
 0x6c6   :  { %v958_v8 = vpop.f32.mrb[14].mxu0 }
 0x6c7   :  { %1422 = shalt.err (!%p1419_p10)
}
 0x6c8   :  { %s1423_s0 = scalar_lea.hbm %s1687_s8, 32 }
 0x6c9   :  { %p1424_p11 = scmp.ne.s32.totalorder %s1687_s8, %s1423_s0  ;;  %p1427_p12 = scmp.lt.u32.totalorder %s1423_s0, %s1687_s8 }
 0x6cb   :  { %p1429_p13 = pnand %p1427_p12, %p1424_p11 }
 0x6cd   :  { %1432 = shalt.err (!%p1429_p13)
}
 0x6ce   :  { %996 = dma.vmem_to_hbm [thread:$0]  %s994_s5, 32, %s1687_s8, [#allocation4]   ;;  %v1164_v9 = vpop.f32.mrb[15].mxu0 }
 0x6cf   :  { %1439 = dma.done.wait [#allocation4], 32  }
 0x6d0   :  { %1440 = vsyncadd [#allocation4], 4294967264 }
 0x6d1   :  { %1441 = dma.done.wait [#allocation12], 64  }
 0x6d2   :  { %1442 = vsyncadd [#allocation12], 4294967232 }
 0x6d3   :  { %1026 = vsyncpa [#allocation3], 1 }
 0x6d4   :  { %1027 = vsyncpa [#allocation6], 1 }
 0x6d5   :  { %1028 = vsyncpa [#allocation9], 1 }
 0x6d6   :  { %1029 = vsyncpa [#allocation4], 1 }
 0x6d7   :  { %1030 = vsyncpa [#allocation12], 1 }

</bundles_post_ra>
